<compile_context>
chip_gen: v6e
topology: v6e:2x2x1
jax: 0.10.0
libtpu: 0.0.40
codegen_flags: <defaults>
</compile_context>

<pallas_src>
import functools

import jax
import jax.numpy as jnp
from jax.experimental import pallas as pl
from jax.experimental.pallas import tpu as pltpu

NEG_SLOPE = 0.01   # nn.LeakyReLU default
BN_EPS = 1e-5      # nn.BatchNorm1d default

D_IN, D_H1, D_H2, D_H3, D_OUT = 20, 64, 128, 256, 20


def _leaky_relu(h):
    return jnp.where(h > 0, h, NEG_SLOPE * h)


# ----------------------------- pass 1 kernel --------------------------------
def _pass1_kernel(x_ref, w1_ref, w2_ref, w3_ref, bias_ref, h3_ref, stats_ref,
                  *, tile_b, n_valid, padded_b, mm_dtype):
    """Linear(20,64)+LReLU -> Linear(64,128)+LReLU -> Linear(128,256)+LReLU.

    Emits the h3 activation tile and per-tile (sum, sum_sq) partials so that
    full-batch BatchNorm statistics can be assembled outside the grid.
    """
    x = x_ref[...]                                           # [tile_b, 20] f32

    b1 = bias_ref[0:1, 0:D_H1]                               # [1, 64]
    b2 = bias_ref[1:2, 0:D_H2]                               # [1, 128]
    b3 = bias_ref[2:3, :]                                    # [1, 256]

    # bf16 MXU operands, f32 accumulation; elementwise stays f32.
    h = jnp.dot(x.astype(mm_dtype), w1_ref[...],
                preferred_element_type=jnp.float32) + b1
    h = _leaky_relu(h)                                       # [tile_b, 64]
    h = jnp.dot(h.astype(mm_dtype), w2_ref[...],
                preferred_element_type=jnp.float32) + b2
    h = _leaky_relu(h)                                       # [tile_b, 128]
    h = jnp.dot(h.astype(mm_dtype), w3_ref[...],
                preferred_element_type=jnp.float32) + b3
    h = _leaky_relu(h)                                       # [tile_b, 256] f32

    h3_ref[...] = h

    # Per-tile BN partials (mask out batch-padding rows so stats stay exact).
    if n_valid != padded_b:
        rows = (pl.program_id(0) * tile_b
                + jax.lax.broadcasted_iota(jnp.int32, (tile_b, 1), 0))
        h = h * (rows < n_valid).astype(h.dtype)
    stats_ref[0] = jnp.concatenate(
        [jnp.sum(h, axis=0, keepdims=True),
         jnp.sum(h * h, axis=0, keepdims=True)], axis=0)     # [2, 256]


# ----------------------------- pass 2 kernel --------------------------------
def _pass2_kernel(h3_ref, ss_ref, w4_ref, b4_ref, out_ref, *, mm_dtype):
    """scale/shift (folded BatchNorm) -> Tanh -> Linear(256, 20)."""
    h = h3_ref[...]                                          # [tile_b, 256] f32
    scale = ss_ref[0:1, :]                                   # gamma * rsqrt(var+eps)
    shift = ss_ref[1:2, :]                                   # beta - mean*scale
    h = jnp.tanh(h * scale + shift)
    out = jnp.dot(h.astype(mm_dtype), w4_ref[...],
                  preferred_element_type=jnp.float32) + b4_ref[...]
    out_ref[...] = out.astype(out_ref.dtype)


# ------------------------------- wrapper -------------------------------------
def tonet_forward(x, params, gamma, beta, *, tile_b=128,
                  mm_dtype=jnp.bfloat16):
    """Forward pass of ToNetNeuralNetwork (training-mode BatchNorm1d).

    For large batches raise tile_b (512-2048 hits ~85% of HBM roofline on
    v5e/v6e); keep tiles modest (<~8K rows) for v7x's 64 MiB VMEM.
    """
    (w1, b1), (w2, b2), (w3, b3), (w4, b4) = params
    B = x.shape[0]
    n_tiles = pl.cdiv(B, tile_b)
    B_pad = n_tiles * tile_b
    if B_pad != B:
        x = jnp.pad(x, ((0, B_pad - B), (0, 0)))

    # One-time bf16 copies of the weights (MXU operands); biases stay f32 and
    # are added after the f32-accumulated matmul.
    w1c, w2c, w3c, w4c = (w.astype(mm_dtype) for w in (w1, w2, w3, w4))

    # Pack the three hidden-layer biases into one resident [3, 256] buffer to
    # cut the number of tiny parameter DMAs.
    bias_pack = jnp.zeros((3, D_H3), jnp.float32)
    bias_pack = bias_pack.at[0, :D_H1].set(b1[0])
    bias_pack = bias_pack.at[1, :D_H2].set(b2[0])
    bias_pack = bias_pack.at[2, :].set(b3[0])

    const2 = lambda i: (0, 0)
    parallel = pltpu.CompilerParams(dimension_semantics=("parallel",))

    flops1 = 2 * B_pad * (D_IN * D_H1 + D_H1 * D_H2 + D_H2 * D_H3)
    bytes1 = (4 * (B_pad * D_IN + B_pad * D_H3 + n_tiles * 2 * D_H3 + 3 * D_H3)
              + 2 * (D_IN * D_H1 + D_H1 * D_H2 + D_H2 * D_H3))

    # ---- pass 1: layers 1..3 + per-tile BN partials -------------------------
    h3, stats = pl.pallas_call(
        functools.partial(_pass1_kernel, tile_b=tile_b, n_valid=B,
                          padded_b=B_pad, mm_dtype=mm_dtype),
        grid=(n_tiles,),
        in_specs=[
            pl.BlockSpec((tile_b, D_IN), lambda i: (i, 0)),   # x tile
            pl.BlockSpec((D_IN, D_H1), const2),               # w1 (resident)
            pl.BlockSpec((D_H1, D_H2), const2),               # w2 (resident)
            pl.BlockSpec((D_H2, D_H3), const2),               # w3 (resident)
            pl.BlockSpec((3, D_H3), const2),                  # packed biases
        ],
        out_specs=[
            pl.BlockSpec((tile_b, D_H3), lambda i: (i, 0)),   # h3 tile
            pl.BlockSpec((1, 2, D_H3), lambda i: (i, 0, 0)),  # per-tile stats
        ],
        out_shape=[
            jax.ShapeDtypeStruct((B_pad, D_H3), jnp.float32),
            jax.ShapeDtypeStruct((n_tiles, 2, D_H3), jnp.float32),
        ],
        compiler_params=parallel,
        cost_estimate=pl.CostEstimate(flops=flops1, transcendentals=0,
                                      bytes_accessed=bytes1),
    )(x, w1c, w2c, w3c, bias_pack)

    # ---- full-batch BatchNorm1d stats (training mode, biased variance) ------
    # Tiny [n_tiles, 2, 256] reduction in plain JAX; gamma/beta/eps are folded
    # into a single per-feature scale/shift for pass 2.
    sums = jnp.sum(stats, axis=0)                        # [2, 256]
    mean = sums[0] / B
    var = jnp.maximum(sums[1] / B - mean * mean, 0.0)    # E[h^2] - mean^2, biased
    inv_std = jax.lax.rsqrt(var + BN_EPS)
    scale = gamma[0] * inv_std
    shift = beta[0] - mean * scale
    ss = jnp.stack([scale, shift], axis=0)               # [2, 256]

    flops2 = 2 * B_pad * D_H3 * D_OUT
    bytes2 = (4 * (B_pad * D_H3 + B_pad * D_OUT + 2 * D_H3 + D_OUT)
              + 2 * D_H3 * D_OUT)

    # ---- pass 2: normalize + tanh + final Linear -----------------------------
    out = pl.pallas_call(
        functools.partial(_pass2_kernel, mm_dtype=mm_dtype),
        grid=(n_tiles,),
        in_specs=[
            pl.BlockSpec((tile_b, D_H3), lambda i: (i, 0)),   # h3 tile
            pl.BlockSpec((2, D_H3), const2),                  # scale/shift
            pl.BlockSpec((D_H3, D_OUT), const2),              # w4 (resident)
            pl.BlockSpec((1, D_OUT), const2),                 # b4
        ],
        out_specs=pl.BlockSpec((tile_b, D_OUT), lambda i: (i, 0)),
        out_shape=jax.ShapeDtypeStruct((B_pad, D_OUT), jnp.float32),
        compiler_params=parallel,
        cost_estimate=pl.CostEstimate(flops=flops2,
                                      transcendentals=B_pad * D_H3,
                                      bytes_accessed=bytes2),
    )(h3, ss, w4c, b4)

    return out[:B]


# ------------------------------ reference ------------------------------------
def tonet_reference(x, params, gamma, beta, *, mm_dtype=jnp.float32):
    """Pure-JAX forward. With mm_dtype=bf16 it mirrors the kernel's matmul
    casting (bf16 operands, f32 accumulation); with f32 it is the exact
    PyTorch-equivalent forward."""
    (w1, b1), (w2, b2), (w3, b3), (w4, b4) = params

    def mm(a, w):
        return jnp.dot(a.astype(mm_dtype), w.astype(mm_dtype),
                       preferred_element_type=jnp.float32)

    h = _leaky_relu(mm(x, w1) + b1)
    h = _leaky_relu(mm(h, w2) + b2)
    h = _leaky_relu(mm(h, w3) + b3)
    mean = jnp.mean(h, axis=0, keepdims=True)
    var = jnp.mean((h - mean) ** 2, axis=0, keepdims=True)   # biased (training)
    h = (h - mean) * jax.lax.rsqrt(var + BN_EPS) * gamma + beta
    h = jnp.tanh(h)
    return mm(h, w4) + b4


def init_params(key):
    """Deterministic PyTorch-style (uniform +-1/sqrt(fan_in)) initialization.
    Weights stored transposed vs. PyTorch, i.e. [in_features, out_features]."""
    dims = [(D_IN, D_H1), (D_H1, D_H2), (D_H2, D_H3), (D_H3, D_OUT)]
    params = []
    for (fan_in, fan_out) in dims:
        key, kw, kb = jax.random.split(key, 3)
        bound = 1.0 / jnp.sqrt(jnp.float32(fan_in))
        w = jax.random.uniform(kw, (fan_in, fan_out), jnp.float32, -bound, bound)
        b = jax.random.uniform(kb, (1, fan_out), jnp.float32, -bound, bound)
        params.append((w, b))
    gamma = jnp.ones((1, D_H3), jnp.float32)   # BatchNorm1d affine defaults
    beta = jnp.zeros((1, D_H3), jnp.float32)
    return params, gamma, beta


if __name__ == "__main__":
    key = jax.random.PRNGKey(0)
    kp, kx = jax.random.split(key)
    params, gamma, beta = init_params(kp)

    # Small demo shape; 200 is deliberately NOT a multiple of the 128-row tile
    # so the batch-padding + masked-statistics path is exercised.
    B = 200
    x = jax.random.normal(kx, (B, D_IN), jnp.float32)

    out = jax.block_until_ready(jax.jit(tonet_forward)(x, params, gamma, beta))
    assert out.shape == (B, D_OUT)

    # (a) exact check vs. a reference that uses the same bf16-operand /
    #     f32-accumulate matmuls as the kernel.
    ref_bf16 = tonet_reference(x, params, gamma, beta, mm_dtype=jnp.bfloat16)
    assert jnp.allclose(out, ref_bf16, atol=1e-3, rtol=1e-3), (
        "bf16-matched reference mismatch:",
        float(jnp.max(jnp.abs(out - ref_bf16))))

    # (b) sanity check vs. the pure-f32 PyTorch-equivalent forward
    #     (loose tolerance only accounts for bf16 matmul operands).
    ref_f32 = tonet_reference(x, params, gamma, beta, mm_dtype=jnp.float32)
    assert jnp.allclose(out, ref_f32, atol=3e-2, rtol=3e-2), (
        "f32 reference mismatch:",
        float(jnp.max(jnp.abs(out - ref_f32))))

    print("KERNEL_OK")
</pallas_src>

<mosaic_0001>
module attributes {stable_mosaic.version = 11 : i64} {
  func.func @_pass1_kernel(%arg0: i32, %arg1: memref<128x20xf32, #tpu.memory_space<vmem>>, %arg2: memref<20x64xbf16, #tpu.memory_space<vmem>>, %arg3: memref<64x128xbf16, #tpu.memory_space<vmem>>, %arg4: memref<128x256xbf16, #tpu.memory_space<vmem>>, %arg5: memref<3x256xf32, #tpu.memory_space<vmem>>, %arg6: memref<128x256xf32, #tpu.memory_space<vmem>>, %arg7: memref<1x2x256xf32, #tpu.memory_space<vmem>>) attributes {dimension_semantics = [#tpu.dimension_semantics<parallel>], iteration_bounds = array<i64: 2>, scalar_prefetch = 0 : i64, scratch_operands = 0 : i64, tpu.core_type = #tpu.core_type<tc>, window_params = [{transform_indices = @transform_0, window_bounds = array<i64: 128, 20>}, {pipeline_mode = #tpu.pipeline_mode<synchronous>, transform_indices = @transform_1, window_bounds = array<i64: 20, 64>}, {pipeline_mode = #tpu.pipeline_mode<synchronous>, transform_indices = @transform_2, window_bounds = array<i64: 64, 128>}, {pipeline_mode = #tpu.pipeline_mode<synchronous>, transform_indices = @transform_3, window_bounds = array<i64: 128, 256>}, {pipeline_mode = #tpu.pipeline_mode<synchronous>, transform_indices = @transform_4, window_bounds = array<i64: 3, 256>}, {transform_indices = @transform_5, window_bounds = array<i64: 128, 256>}, {transform_indices = @transform_6, window_bounds = array<i64: 1, 2, 256>}]} {
    %c0 = arith.constant 0 : index
    %c0_0 = arith.constant 0 : index
    %0 = vector.load %arg1[%c0, %c0_0] : memref<128x20xf32, #tpu.memory_space<vmem>>, vector<128x20xf32>
    %c0_1 = arith.constant 0 : index
    %c0_2 = arith.constant 0 : index
    %1 = vector.load %arg5[%c0_1, %c0_2] : memref<3x256xf32, #tpu.memory_space<vmem>>, vector<1x64xf32>
    %c1 = arith.constant 1 : index
    %c0_3 = arith.constant 0 : index
    %2 = vector.load %arg5[%c1, %c0_3] : memref<3x256xf32, #tpu.memory_space<vmem>>, vector<1x128xf32>
    %c2 = arith.constant 2 : index
    %c0_4 = arith.constant 0 : index
    %3 = vector.load %arg5[%c2, %c0_4] : memref<3x256xf32, #tpu.memory_space<vmem>>, vector<1x256xf32>
    %4 = arith.truncf %0 : vector<128x20xf32> to vector<128x20xbf16>
    %c0_5 = arith.constant 0 : index
    %c0_6 = arith.constant 0 : index
    %5 = vector.load %arg2[%c0_5, %c0_6] : memref<20x64xbf16, #tpu.memory_space<vmem>>, vector<20x64xbf16>
    %cst = arith.constant dense<0.000000e+00> : vector<128x64xf32>
    %6 = tpu.matmul %4, %5, %cst {dimension_numbers = #tpu.dot_dimension_numbers<[1], [0], [0], [1], [0, 0, 1, 1], [], []>} : vector<128x20xbf16>, vector<20x64xbf16>, vector<128x64xf32> -> vector<128x64xf32>
    %7 = vector.broadcast %1 : vector<1x64xf32> to vector<128x64xf32>
    %8 = arith.addf %6, %7 : vector<128x64xf32>
    %cst_7 = arith.constant 0.000000e+00 : f32
    %9 = vector.broadcast %cst_7 : f32 to vector<128x64xf32>
    %10 = arith.cmpf ogt, %8, %9 : vector<128x64xf32>
    %cst_8 = arith.constant 0.00999999977 : f32
    %11 = vector.broadcast %cst_8 : f32 to vector<128x64xf32>
    %12 = arith.mulf %11, %8 : vector<128x64xf32>
    %13 = arith.select %10, %8, %12 : vector<128x64xi1>, vector<128x64xf32>
    %14 = arith.truncf %13 : vector<128x64xf32> to vector<128x64xbf16>
    %c0_9 = arith.constant 0 : index
    %c0_10 = arith.constant 0 : index
    %15 = vector.load %arg3[%c0_9, %c0_10] : memref<64x128xbf16, #tpu.memory_space<vmem>>, vector<64x128xbf16>
    %cst_11 = arith.constant dense<0.000000e+00> : vector<128x128xf32>
    %16 = tpu.matmul %14, %15, %cst_11 {dimension_numbers = #tpu.dot_dimension_numbers<[1], [0], [0], [1], [0, 0, 1, 1], [], []>} : vector<128x64xbf16>, vector<64x128xbf16>, vector<128x128xf32> -> vector<128x128xf32>
    %17 = vector.broadcast %2 : vector<1x128xf32> to vector<128x128xf32>
    %18 = arith.addf %16, %17 : vector<128x128xf32>
    %cst_12 = arith.constant 0.000000e+00 : f32
    %19 = vector.broadcast %cst_12 : f32 to vector<128x128xf32>
    %20 = arith.cmpf ogt, %18, %19 : vector<128x128xf32>
    %cst_13 = arith.constant 0.00999999977 : f32
    %21 = vector.broadcast %cst_13 : f32 to vector<128x128xf32>
    %22 = arith.mulf %21, %18 : vector<128x128xf32>
    %23 = arith.select %20, %18, %22 : vector<128x128xi1>, vector<128x128xf32>
    %24 = arith.truncf %23 : vector<128x128xf32> to vector<128x128xbf16>
    %c0_14 = arith.constant 0 : index
    %c0_15 = arith.constant 0 : index
    %25 = vector.load %arg4[%c0_14, %c0_15] : memref<128x256xbf16, #tpu.memory_space<vmem>>, vector<128x256xbf16>
    %cst_16 = arith.constant dense<0.000000e+00> : vector<128x256xf32>
    %26 = tpu.matmul %24, %25, %cst_16 {dimension_numbers = #tpu.dot_dimension_numbers<[1], [0], [0], [1], [0, 0, 1, 1], [], []>} : vector<128x128xbf16>, vector<128x256xbf16>, vector<128x256xf32> -> vector<128x256xf32>
    %27 = vector.broadcast %3 : vector<1x256xf32> to vector<128x256xf32>
    %28 = arith.addf %26, %27 : vector<128x256xf32>
    %cst_17 = arith.constant 0.000000e+00 : f32
    %29 = vector.broadcast %cst_17 : f32 to vector<128x256xf32>
    %30 = arith.cmpf ogt, %28, %29 : vector<128x256xf32>
    %cst_18 = arith.constant 0.00999999977 : f32
    %31 = vector.broadcast %cst_18 : f32 to vector<128x256xf32>
    %32 = arith.mulf %31, %28 : vector<128x256xf32>
    %33 = arith.select %30, %28, %32 : vector<128x256xi1>, vector<128x256xf32>
    %c0_19 = arith.constant 0 : index
    %c0_20 = arith.constant 0 : index
    %34 = vector.load %arg6[%c0_19, %c0_20] : memref<128x256xf32, #tpu.memory_space<vmem>>, vector<128x256xf32>
    tpu.vector_store %arg6[%c0_19, %c0_20], %33 {strides = array<i32>} : memref<128x256xf32, #tpu.memory_space<vmem>>, vector<128x256xf32>,
    %c128_i32 = arith.constant 128 : i32
    %35 = arith.muli %arg0, %c128_i32 : i32
    %36 = tpu.iota {dimensions = array<i32: 0>} : vector<128x1xi32>
    %37 = vector.broadcast %35 : i32 to vector<128x1xi32>
    %38 = arith.addi %37, %36 : vector<128x1xi32>
    %c200_i32 = arith.constant 200 : i32
    %39 = vector.broadcast %c200_i32 : i32 to vector<128x1xi32>
    %40 = arith.cmpi slt, %38, %39 : vector<128x1xi32>
    %41 = arith.extui %40 : vector<128x1xi1> to vector<128x1xi32>
    %42 = arith.sitofp %41 : vector<128x1xi32> to vector<128x1xf32>
    %43 = vector.broadcast %42 : vector<128x1xf32> to vector<128x256xf32>
    %44 = arith.mulf %33, %43 : vector<128x256xf32>
    %cst_21 = arith.constant dense<0.000000e+00> : vector<256xf32>
    %45 = vector.multi_reduction <add>, %44, %cst_21 [0] : vector<128x256xf32> to vector<256xf32>
    %46 = vector.shape_cast %45 : vector<256xf32> to vector<1x256xf32>
    %47 = arith.mulf %44, %44 : vector<128x256xf32>
    %cst_22 = arith.constant dense<0.000000e+00> : vector<256xf32>
    %48 = vector.multi_reduction <add>, %47, %cst_22 [0] : vector<128x256xf32> to vector<256xf32>
    %49 = vector.shape_cast %48 : vector<256xf32> to vector<1x256xf32>
    %50 = tpu.concatenate %46, %49 in 0 : vector<1x256xf32>, vector<1x256xf32> -> vector<2x256xf32>
    %c0_23 = arith.constant 0 : index
    %c0_24 = arith.constant 0 : index
    %c0_25 = arith.constant 0 : index
    %51 = vector.load %arg7[%c0_23, %c0_24, %c0_25] : memref<1x2x256xf32, #tpu.memory_space<vmem>>, vector<1x2x256xf32>
    %52 = vector.shape_cast %51 : vector<1x2x256xf32> to vector<2x256xf32>
    %53 = vector.shape_cast %50 : vector<2x256xf32> to vector<1x2x256xf32>
    tpu.vector_store %arg7[%c0_23, %c0_24, %c0_25], %53 {strides = array<i32>} : memref<1x2x256xf32, #tpu.memory_space<vmem>>, vector<1x2x256xf32>,
    return
  }
  func.func @transform_0(%arg0: i32) -> (i32, i32) {
    %c0_i32 = arith.constant 0 : i32
    %c0_i32_0 = arith.constant 0 : i32
    return %arg0, %c0_i32 : i32, i32
  }
  func.func @transform_1(%arg0: i32) -> (i32, i32) {
    %c0_i32 = arith.constant 0 : i32
    %c0_i32_0 = arith.constant 0 : i32
    %c0_i32_1 = arith.constant 0 : i32
    return %c0_i32, %c0_i32_0 : i32, i32
  }
  func.func @transform_2(%arg0: i32) -> (i32, i32) {
    %c0_i32 = arith.constant 0 : i32
    %c0_i32_0 = arith.constant 0 : i32
    %c0_i32_1 = arith.constant 0 : i32
    return %c0_i32, %c0_i32_0 : i32, i32
  }
  func.func @transform_3(%arg0: i32) -> (i32, i32) {
    %c0_i32 = arith.constant 0 : i32
    %c0_i32_0 = arith.constant 0 : i32
    %c0_i32_1 = arith.constant 0 : i32
    return %c0_i32, %c0_i32_0 : i32, i32
  }
  func.func @transform_4(%arg0: i32) -> (i32, i32) {
    %c0_i32 = arith.constant 0 : i32
    %c0_i32_0 = arith.constant 0 : i32
    %c0_i32_1 = arith.constant 0 : i32
    return %c0_i32, %c0_i32_0 : i32, i32
  }
  func.func @transform_5(%arg0: i32) -> (i32, i32) {
    %c0_i32 = arith.constant 0 : i32
    %c0_i32_0 = arith.constant 0 : i32
    return %arg0, %c0_i32 : i32, i32
  }
  func.func @transform_6(%arg0: i32) -> (i32, i32, i32) {
    %c0_i32 = arith.constant 0 : i32
    %c0_i32_0 = arith.constant 0 : i32
    %c0_i32_1 = arith.constant 0 : i32
    return %arg0, %c0_i32, %c0_i32_0 : i32, i32, i32
  }
}

module attributes {stable_mosaic.version = 11 : i64} {
  func.func @_pass2_kernel(%arg0: i32, %arg1: memref<128x256xf32, #tpu.memory_space<vmem>>, %arg2: memref<2x256xf32, #tpu.memory_space<vmem>>, %arg3: memref<256x20xbf16, #tpu.memory_space<vmem>>, %arg4: memref<1x20xf32, #tpu.memory_space<vmem>>, %arg5: memref<128x20xf32, #tpu.memory_space<vmem>>) attributes {dimension_semantics = [#tpu.dimension_semantics<parallel>], iteration_bounds = array<i64: 2>, scalar_prefetch = 0 : i64, scratch_operands = 0 : i64, tpu.core_type = #tpu.core_type<tc>, window_params = [{transform_indices = @transform_0, window_bounds = array<i64: 128, 256>}, {pipeline_mode = #tpu.pipeline_mode<synchronous>, transform_indices = @transform_1, window_bounds = array<i64: 2, 256>}, {pipeline_mode = #tpu.pipeline_mode<synchronous>, transform_indices = @transform_2, window_bounds = array<i64: 256, 20>}, {pipeline_mode = #tpu.pipeline_mode<synchronous>, transform_indices = @transform_3, window_bounds = array<i64: 1, 20>}, {transform_indices = @transform_4, window_bounds = array<i64: 128, 20>}]} {
    %c0 = arith.constant 0 : index
    %c0_0 = arith.constant 0 : index
    %0 = vector.load %arg1[%c0, %c0_0] : memref<128x256xf32, #tpu.memory_space<vmem>>, vector<128x256xf32>
    %c0_1 = arith.constant 0 : index
    %c0_2 = arith.constant 0 : index
    %1 = vector.load %arg2[%c0_1, %c0_2] : memref<2x256xf32, #tpu.memory_space<vmem>>, vector<1x256xf32>
    %c1 = arith.constant 1 : index
    %c0_3 = arith.constant 0 : index
    %2 = vector.load %arg2[%c1, %c0_3] : memref<2x256xf32, #tpu.memory_space<vmem>>, vector<1x256xf32>
    %3 = vector.broadcast %1 : vector<1x256xf32> to vector<128x256xf32>
    %4 = arith.mulf %0, %3 : vector<128x256xf32>
    %5 = vector.broadcast %2 : vector<1x256xf32> to vector<128x256xf32>
    %6 = arith.addf %4, %5 : vector<128x256xf32>
    %7 = math.tanh %6 : vector<128x256xf32>
    %8 = arith.truncf %7 : vector<128x256xf32> to vector<128x256xbf16>
    %c0_4 = arith.constant 0 : index
    %c0_5 = arith.constant 0 : index
    %9 = vector.load %arg3[%c0_4, %c0_5] : memref<256x20xbf16, #tpu.memory_space<vmem>>, vector<256x20xbf16>
    %cst = arith.constant dense<0.000000e+00> : vector<128x20xf32>
    %10 = tpu.matmul %8, %9, %cst {dimension_numbers = #tpu.dot_dimension_numbers<[1], [0], [0], [1], [0, 0, 1, 1], [], []>} : vector<128x256xbf16>, vector<256x20xbf16>, vector<128x20xf32> -> vector<128x20xf32>
    %c0_6 = arith.constant 0 : index
    %c0_7 = arith.constant 0 : index
    %11 = vector.load %arg4[%c0_6, %c0_7] : memref<1x20xf32, #tpu.memory_space<vmem>>, vector<1x20xf32>
    %12 = vector.broadcast %11 : vector<1x20xf32> to vector<128x20xf32>
    %13 = arith.addf %10, %12 : vector<128x20xf32>
    %c0_8 = arith.constant 0 : index
    %c0_9 = arith.constant 0 : index
    %14 = vector.load %arg5[%c0_8, %c0_9] : memref<128x20xf32, #tpu.memory_space<vmem>>, vector<128x20xf32>
    tpu.vector_store %arg5[%c0_8, %c0_9], %13 {strides = array<i32>} : memref<128x20xf32, #tpu.memory_space<vmem>>, vector<128x20xf32>,
    return
  }
  func.func @transform_0(%arg0: i32) -> (i32, i32) {
    %c0_i32 = arith.constant 0 : i32
    %c0_i32_0 = arith.constant 0 : i32
    return %arg0, %c0_i32 : i32, i32
  }
  func.func @transform_1(%arg0: i32) -> (i32, i32) {
    %c0_i32 = arith.constant 0 : i32
    %c0_i32_0 = arith.constant 0 : i32
    %c0_i32_1 = arith.constant 0 : i32
    return %c0_i32, %c0_i32_0 : i32, i32
  }
  func.func @transform_2(%arg0: i32) -> (i32, i32) {
    %c0_i32 = arith.constant 0 : i32
    %c0_i32_0 = arith.constant 0 : i32
    %c0_i32_1 = arith.constant 0 : i32
    return %c0_i32, %c0_i32_0 : i32, i32
  }
  func.func @transform_3(%arg0: i32) -> (i32, i32) {
    %c0_i32 = arith.constant 0 : i32
    %c0_i32_0 = arith.constant 0 : i32
    %c0_i32_1 = arith.constant 0 : i32
    return %c0_i32, %c0_i32_0 : i32, i32
  }
  func.func @transform_4(%arg0: i32) -> (i32, i32) {
    %c0_i32 = arith.constant 0 : i32
    %c0_i32_0 = arith.constant 0 : i32
    return %arg0, %c0_i32 : i32, i32
  }
}

</mosaic_0001>

<bundles_post_ra>
// kernel: tonet_forward.2
= control target key start
LH: loop header
LB: loop body
LE: loop exit
PB: predicated region body
PF: predicated region fallthrough
CT: control target
= control target key end

     0   :  { %s1639_s21 = smov 0   ;;  %s2106_s0 = inlined_call_operand.vmem [shape: f32[256,20], index: 0, kind: input, shape index: {}]   ;;  %s2107_s1 = inlined_call_operand.vmem [shape: bf16[20,64], index: 1, kind: input, shape index: {}]   ;;  %s2108_s2 = inlined_call_operand.vmem [shape: bf16[64,128], index: 2, kind: input, shape index: {}]   ;;  %s2109_s3 = inlined_call_operand.vmem [shape: bf16[128,256], index: 3, kind: input, shape index: {}]   ;;  %s2110_s4 = inlined_call_operand.vmem [shape: f32[3,256], index: 4, kind: input, shape index: {}]   ;;  %s2111_s5 = inlined_call_operand.vmem [shape: f32[256,256], index: 5, kind: output, shape index: {0}]   ;;  %s2112_s6 = inlined_call_operand.vmem [shape: f32[2,2,256], index: 6, kind: output, shape index: {1}]  }
   0x1 LB: > { %s1645_s22 = sadd.s32 4294967295, %s1600_s21   ;;  %p1400_p0 = scmp.ge.s32.totalorder %s1600_s21, 1  ;;  %s1600_s21 = sphi %s1639_s21, %s17_s21  }
   0x2   : > { %p216_p1 = scmp.lt.s32.totalorder %s1600_s21, 3 }
   0x4   : > { %p217_p2 = pnand %p1400_p0, %p216_p1 }
   0x5   : > { %s1401_s27 = sshll.u32 (!%p217_p2), %s1645_s22, 4  ;;  %s1449_s10 = sshll.u32 (!%p217_p2), %s1645_s22, 7 }
   0x6   : > { %220 = sbr.rel (%p217_p2) target bundleno = 716 (0x2cc), region = 40  ;;  %p253_p3 = scmp.lt.s32.totalorder (!%p217_p2), %s1401_s27, 31 }
   0x7   : > { %p265_p4 = scmp.lt.s32.totalorder (!%p217_p2), %s1645_s22, 1 }
   0xb   : > { %v1564_v0 = vld [vmem:[%s2107_s1 + $0x8] ss:$0 sps:$4 sm:$0x33]   ;;  %vm340_vm0 = vcmask 1041408   ;;  %v1565_v1 = vld [vmem:[%s2107_s1] sm:$0xff]   ;;  %v1566_v3 = vld [vmem:[%s2108_s2 + $0x18] sm:$0xff]  }
   0xc   : > { %1553 = vmatprep.subr.msk.bf16.mxu0 %vm340_vm0, %v1564_v0  ;;  %v342_v2 = vsel %vm340_vm0, %v1564_v0, 0  ;;  %s2114_s27 = smov (!%p253_p3, %s1401_s27), 31  ;;  %1513 = vmatprep.subr.bf16.mxu1 %v1566_v3  ;;  %vm315_vm1 = vcmask 162816   ;;  %v1567_v28 = vld [vmem:[%s2108_s2 + $0x10] sm:$0xff]   ;;  %v1568_v29 = vld [vmem:[%s2108_s2 + $0x8] sm:$0xff]   ;;  %v1569_v30 = vld [vmem:[%s2108_s2] sm:$0xff]  }
   0xd   : > { %1494 = vmatpush3.bf16.msra.mxu0 %v342_v2  ;;  %1514 = vmatpush3.bf16.msra.mxu1 %v1566_v3  ;;  %s1402_s30 = sshll.u32 %s2114_s27, 3  ;;  %v1703_v31 = vld [vmem:[%s2109_s3 + $0x70] ss:$8 sps:$4 sm:$0xff]   ;;  %v1572_v32 = vld [vmem:[%s2109_s3 + $0x74] ss:$8 sps:$4 sm:$0xff]   ;;  %vm533_vm6 = vcmask 523264  }
   0xe   : > { %1495 = vmatprep.subr.bf16.mxu0 %v1565_v1  ;;  %s1665_s9 = scalar_lea.vmem %s2106_s0, %s1402_s30  ;;  %1515 = vmatprep.subr.bf16.mxu1 %v1567_v28  ;;  %v1711_v33 = vld [vmem:[%s2109_s3 + $0x64] ss:$8 sps:$4 sm:$0xff]   ;;  %v1717_v34 = vld [vmem:[%s2109_s3 + $0x60] ss:$8 sps:$4 sm:$0xff]   ;;  %v1723_v35 = vld [vmem:[%s2109_s3 + $0x54] ss:$8 sps:$4 sm:$0xff]  }
   0xf   : > { %v271_v4 = vld [vmem:[%s1665_s9] sm:$0xff]  ;;  %v272_v5 = vld [vmem:[%s1665_s9 + $0x8] sm:$0xff]  ;;  %v273_v6 = vld [vmem:[%s1665_s9 + $0x10] sm:$0xff]  ;;  %s1469_s13 = sshll.u32 %s2114_s27, 4  ;;  %s2116_s22 = smov (!%p265_p4, %s1645_s22), 1 }
  0x10   : > { %v291_v7 = vpack.c.bf16 %v272_v5, %v271_v4  ;;  %v274_v8 = vld [vmem:[%s1665_s9 + $0x18] sm:$0xff]  ;;  %v275_v9 = vld [vmem:[%s1665_s9 + $0x20] sm:$0xff]  ;;  %v276_v10 = vld [vmem:[%s1665_s9 + $0x28] sm:$0xff]  ;;  %s1896_s15 = scalar_lea.vmem %s2111_s5, %s1469_s13  ;;  %s1470_s16 = sshll.u32 %s2116_s22, 2 }
  0x11   : > { %1496 = vmatpush3.bf16.msra.mxu0 %v1565_v1  ;;  %v292_v11 = vpack.c.bf16 %v274_v8, %v273_v6  ;;  %v293_v12 = vpack.c.bf16 %v276_v10, %v275_v9  ;;  %v277_v13 = vld [vmem:[%s1665_s9 + $0x30] sm:$0xff]  ;;  %v278_v14 = vld [vmem:[%s1665_s9 + $0x38] sm:$0xff]  ;;  %v279_v15 = vld [vmem:[%s1665_s9 + $0x40] sm:$0xff]  ;;  %1516 = vmatpush3.bf16.msra.mxu1 %v1567_v28  ;;  %s269_s19 = scalar_lea.vmem %s2112_s6, %s1470_s16 }
  0x12   : > { %1497 = vmatprep.mubr.msk.bf16.mxu0 %vm315_vm1, %v291_v7  ;;  %v280_v16 = vld [vmem:[%s1665_s9 + $0x48] sm:$0xff]  ;;  %v294_v17 = vpack.c.bf16 %v278_v14, %v277_v13  ;;  %v281_v19 = vld [vmem:[%s1665_s9 + $0x50] sm:$0xff]  ;;  %v282_v20 = vld [vmem:[%s1665_s9 + $0x58] sm:$0xff]  ;;  %1517 = vmatprep.subr.bf16.mxu1 %v1568_v29 }
  0x13   : > { %v295_v18 = vpack.c.bf16 %v280_v16, %v279_v15  ;;  %v283_v21 = vld [vmem:[%s1665_s9 + $0x60] sm:$0xff]  ;;  %v284_v22 = vld [vmem:[%s1665_s9 + $0x68] sm:$0xff]  ;;  %v296_v23 = vpack.c.bf16 %v282_v20, %v281_v19  ;;  %v285_v25 = vld [vmem:[%s1665_s9 + $0x70] sm:$0xff]  ;;  %818 = vmatprep.subr.bf16.mxu0 %v1572_v32 }
  0x14   : > { %1498 = vmatmul.mubr.msk.bf16.vlgmr.msra.gmra.mxu0 %vm315_vm1, %v292_v11  ;;  %v297_v24 = vpack.c.bf16 %v284_v22, %v283_v21  ;;  %v286_v26 = vld [vmem:[%s1665_s9 + $0x78] sm:$0xff]  ;;  %v1735_v37 = vld [vmem:[%s2109_s3 + $0x44] ss:$8 sps:$4 sm:$0xff]   ;;  %v1741_v38 = vld [vmem:[%s2109_s3 + $0x40] ss:$8 sps:$4 sm:$0xff]  }
  0x15   : > { %1501 = vmatprep.mubr.msk.bf16.mxu0 %vm315_vm1, %v293_v12  ;;  %v298_v27 = vpack.c.bf16 %v286_v26, %v285_v25  ;;  %1518 = vmatpush3.bf16.msra.mxu1 %v1568_v29  ;;  %v1729_v36 = vld [vmem:[%s2109_s3 + $0x50] ss:$8 sps:$4 sm:$0xff]   ;;  %v1747_v39 = vld [vmem:[%s2109_s3 + $0x34] ss:$8 sps:$4 sm:$0xff]   ;;  %v1760_v41 = vld [vmem:[%s2110_s4] ss:$0 sm:$0xff] }
  0x16   : > { %1519 = vmatprep.subr.bf16.mxu1 %v1569_v30  ;;  %819 = vmatpush1.bf16.msra.mxu0 %v1703_v31  ;;  %v1753_v40 = vld [vmem:[%s2109_s3 + $0x30] ss:$8 sps:$4 sm:$0xff]  }
  0x17   : > { %820 = vmatprep.subr.bf16.mxu0 %v1711_v33 }
  0x19   : > { %1520 = vmatpush3.bf16.msra.mxu1 %v1569_v30 }
  0x1a   : > { %1537 = vmatprep.subr.bf16.mxu1 %v1572_v32  ;;  %821 = vmatpush1.bf16.msra.mxu0 %v1717_v34 }
  0x1b   : > { %822 = vmatprep.subr.bf16.mxu0 %v1723_v35 }
  0x1c   : > { %1502 = vmatmul.mubr.msk.bf16.gmra.mxu0 %vm315_vm1, %v294_v17 }
  0x1d   : > { %1505 = vmatprep.mubr.msk.bf16.mxu0 %vm315_vm1, %v295_v18 }
  0x1e   : > { %823 = vmatpush1.bf16.msra.mxu0 %v1729_v36 }
  0x1f   : > { %824 = vmatprep.subr.bf16.mxu0 %v1735_v37 }
  0x22   : > { %825 = vmatpush1.bf16.msra.mxu0 %v1741_v38 }
  0x23   : > { %826 = vmatprep.subr.bf16.mxu0 %v1747_v39 }
  0x24   : > { %1506 = vmatmul.mubr.msk.bf16.gmra.mxu0 %vm315_vm1, %v296_v23 }
  0x25   : > { %1509 = vmatprep.mubr.msk.bf16.mxu0 %vm315_vm1, %v297_v24 }
  0x26   : > { %827 = vmatpush1.bf16.msra.mxu0 %v1753_v40 }
  0x2c   : > { %1510 = vmatmul.mubr.msk.bf16.gmra.mxu0 %vm315_vm1, %v298_v27 }
  0xd4   : > { %v1499_v42 = vpop.f32.mrf.mxu0 }
  0xd5   : > { %v387_v43 = vadd.f32 %v1499_v42, %v1760_v41 }
  0xd6   : > { %v378_v44 = vpop.f32.mrf.mxu0 }
  0xd7   : > { %v379_v45 = vadd.f32 %v1760_v41, %v378_v44  ;;  %v459_v48 = vmul.f32 0.01, %v387_v43  ;;  %vm443_vm3 = vcmp.gt.f32.partialorder %v387_v43, 0.0 }
  0xd8   : > { %v1500_v46 = vpop.f32.mrf.mxu0 }
  0xd9   : > { %v390_v47 = vadd.f32 %v1500_v46, %v1760_v41  ;;  %v457_v50 = vmul.f32 0.01, %v379_v45  ;;  %vm441_vm4 = vcmp.gt.f32.partialorder %v379_v45, 0.0  ;;  %v475_v58 = vsel %vm443_vm3, %v387_v43, %v459_v48 }
  0xda   : > { %v381_v49 = vpop.f32.mrf.mxu0 }
  0xdb   : > { %vm444_vm2 = vcmp.gt.f32.partialorder %v390_v47, 0.0  ;;  %v460_v51 = vmul.f32 0.01, %v390_v47  ;;  %v382_v52 = vadd.f32 %v1760_v41, %v381_v49  ;;  %v473_v60 = vsel %vm441_vm4, %v379_v45, %v457_v50 }
  0xdc   : > { %v1503_v53 = vpop.f32.mrf.mxu0 }
  0xdd   : > { %v476_v54 = vsel %vm444_vm2, %v390_v47, %v460_v51  ;;  %v458_v55 = vmul.f32 0.01, %v382_v52  ;;  %v403_v56 = vadd.f32 %v1503_v53, %v1760_v41  ;;  %vm442_vm5 = vcmp.gt.f32.partialorder %v382_v52, 0.0  ;;  %v1588_v53 = vld [vmem:[%s2109_s3 + $0x10] ss:$8 sps:$4 sm:$0xff]  }
  0xde   : > { %v394_v57 = vpop.f32.mrf.mxu0  ;;  %v490_v62 = vpack.c.bf16 %v476_v54, %v475_v58  ;;  %v1593_v54 = vld [vmem:[%s2109_s3 + $0x4] ss:$8 sps:$4 sm:$0xff]   ;;  %v1818_v58 = vld [vmem:[%s2110_s4 + $0x1] ss:$0 sm:$0xff] }
  0xdf   : > { %v395_v59 = vadd.f32 %v1760_v41, %v394_v57  ;;  %v474_v61 = vsel %vm442_vm5, %v382_v52, %v458_v55  ;;  %v463_v63 = vmul.f32 0.01, %v403_v56  ;;  %vm447_vm7 = vcmp.gt.f32.partialorder %v403_v56, 0.0  ;;  %v1585_v52 = vld [vmem:[%s2109_s3 + $0x20] ss:$8 sps:$4 sm:$0xff]  }
  0xe0   : > { %v1504_v0 = vpop.f32.mrf.mxu0  ;;  %v489_v1 = vpack.c.bf16 %v474_v61, %v473_v60  ;;  %v1591_v55 = vld [vmem:[%s2109_s3] ss:$8 sps:$4 sm:$0xff]  }
  0xe1   : > { %vm445_vm8 = vcmp.gt.f32.partialorder %v395_v59, 0.0  ;;  %v461_v2 = vmul.f32 0.01, %v395_v59  ;;  %v406_v3 = vadd.f32 %v1504_v0, %v1760_v41  ;;  %v479_v7 = vsel %vm447_vm7, %v403_v56, %v463_v63 }
  0xe2   : > { %v397_v4 = vpop.f32.mrf.mxu0  ;;  %1521 = vmatprep.mubr.msk.bf16.mxu1 %vm533_vm6, %v489_v1  ;;  %v1602_v56 = vmov 0  }
  0xe3   : > { %vm448_vm9 = vcmp.gt.f32.partialorder %v406_v3, 0.0  ;;  %v464_v5 = vmul.f32 0.01, %v406_v3  ;;  %v398_v6 = vadd.f32 %v1760_v41, %v397_v4  ;;  %1522 = vmatmul.mubr.msk.bf16.vlgmr.msra.gmra.mxu1 %vm533_vm6, %v490_v62  ;;  %v477_v8 = vsel %vm445_vm8, %v395_v59, %v461_v2  ;;  %850 = vmatprep.mubr.bf16.mxu0 %v1602_v56 }
  0xe4   : > { %v1507_v9 = vpop.f32.mrf.mxu0  ;;  %1545 = vmatpush1.bf16.msra.mxu1 %v1703_v31 }
  0xe5   : > { %v480_v10 = vsel %vm448_vm9, %v406_v3, %v464_v5  ;;  %vm446_vm10 = vcmp.gt.f32.partialorder %v398_v6, 0.0  ;;  %v462_v11 = vmul.f32 0.01, %v398_v6  ;;  %v419_v12 = vadd.f32 %v1507_v9, %v1760_v41  ;;  %1538 = vmatprep.subr.bf16.mxu1 %v1711_v33 }
  0xe6   : > { %v410_v13 = vpop.f32.mrf.mxu0  ;;  %v492_v14 = vpack.c.bf16 %v480_v10, %v479_v7 }
  0xe7   : > { %v478_v15 = vsel %vm446_vm10, %v398_v6, %v462_v11  ;;  %v411_v16 = vadd.f32 %v1760_v41, %v410_v13  ;;  %v467_v18 = vmul.f32 0.01, %v419_v12  ;;  %vm451_vm11 = vcmp.gt.f32.partialorder %v419_v12, 0.0 }
  0xe8   : > { %v491_v17 = vpack.c.bf16 %v478_v15, %v477_v8  ;;  %v1508_v19 = vpop.f32.mrf.mxu0  ;;  %1546 = vmatpush1.bf16.msra.mxu1 %v1717_v34 }
  0xe9   : > { %vm449_vm12 = vcmp.gt.f32.partialorder %v411_v16, 0.0  ;;  %v465_v20 = vmul.f32 0.01, %v411_v16  ;;  %v422_v21 = vadd.f32 %v1508_v19, %v1760_v41  ;;  %1539 = vmatprep.subr.bf16.mxu1 %v1723_v35  ;;  %v483_v25 = vsel %vm451_vm11, %v419_v12, %v467_v18 }
  0xea   : > { %v413_v22 = vpop.f32.mrf.mxu0  ;;  %1525 = vmatprep.mubr.msk.bf16.mxu1 %vm533_vm6, %v491_v17 }
  0xeb   : > { %vm452_vm13 = vcmp.gt.f32.partialorder %v422_v21, 0.0  ;;  %v468_v23 = vmul.f32 0.01, %v422_v21  ;;  %v414_v24 = vadd.f32 %v1760_v41, %v413_v22  ;;  %1526 = vmatmul.mubr.msk.bf16.gmra.mxu1 %vm533_vm6, %v492_v14  ;;  %v481_v26 = vsel %vm449_vm12, %v411_v16, %v465_v20 }
  0xec   : > { %v1511_v27 = vpop.f32.mrf.mxu0  ;;  %1547 = vmatpush1.bf16.msra.mxu1 %v1729_v36 }
  0xed   : > { %v484_v28 = vsel %vm452_vm13, %v422_v21, %v468_v23  ;;  %vm450_vm14 = vcmp.gt.f32.partialorder %v414_v24, 0.0  ;;  %v466_v29 = vmul.f32 0.01, %v414_v24  ;;  %v435_v30 = vadd.f32 %v1511_v27, %v1760_v41  ;;  %1540 = vmatprep.subr.bf16.mxu1 %v1735_v37 }
  0xee   : > { %v426_v31 = vpop.f32.mrf.mxu0  ;;  %v494_v32 = vpack.c.bf16 %v484_v28, %v483_v25 }
  0xef   : > { %v482_v33 = vsel %vm450_vm14, %v414_v24, %v466_v29  ;;  %v427_v34 = vadd.f32 %v1760_v41, %v426_v31  ;;  %v471_v42 = vmul.f32 0.01, %v435_v30  ;;  %vm455_vm15 = vcmp.gt.f32.partialorder %v435_v30, 0.0 }
  0xf0   : > { %v493_v35 = vpack.c.bf16 %v482_v33, %v481_v26  ;;  %v1512_v43 = vpop.f32.mrf.mxu0  ;;  %1548 = vmatpush1.bf16.msra.mxu1 %v1741_v38 }
  0xf1   : > { %v469_v44 = vmul.f32 0.01, %v427_v34  ;;  %v438_v36 = vadd.f32 %v1512_v43, %v1760_v41  ;;  %1541 = vmatprep.subr.bf16.mxu1 %v1747_v39  ;;  %vm453_vm0 = vcmp.gt.f32.partialorder %v427_v34, 0.0  ;;  %v487_v47 = vsel %vm455_vm15, %v435_v30, %v471_v42 }
  0xf2   : > { %v429_v45 = vpop.f32.mrf.mxu0  ;;  %1529 = vmatprep.mubr.msk.bf16.mxu1 %vm533_vm6, %v493_v35 }
  0xf3   : > { %vm456_vm1 = vcmp.gt.f32.partialorder %v438_v36, 0.0  ;;  %v472_v37 = vmul.f32 0.01, %v438_v36  ;;  %v430_v46 = vadd.f32 %v1760_v41, %v429_v45  ;;  %1530 = vmatmul.mubr.msk.bf16.gmra.mxu1 %vm533_vm6, %v494_v32  ;;  %v485_v38 = vsel %vm453_vm0, %v427_v34, %v469_v44  ;;  %v1587_v41 = vld [vmem:[%s2109_s3 + $0x24] ss:$8 sps:$4 sm:$0xff]  }
  0xf4   : > { %1549 = vmatpush1.bf16.msra.mxu1 %v1753_v40  ;;  %828 = vmatprep.subr.bf16.mxu0 %v1587_v41  ;;  %v1590_v40 = vld [vmem:[%s2109_s3 + $0x14] ss:$8 sps:$4 sm:$0xff]  }
  0xf5   : > { %v488_v48 = vsel %vm456_vm1, %v438_v36, %v472_v37  ;;  %vm454_vm2 = vcmp.gt.f32.partialorder %v430_v46, 0.0  ;;  %v470_v49 = vmul.f32 0.01, %v430_v46  ;;  %1542 = vmatprep.subr.bf16.mxu1 %v1587_v41  ;;  %829 = vmatpush1.bf16.msra.mxu0 %v1585_v52 }
  0xf6   : > { %v496_v50 = vpack.c.bf16 %v488_v48, %v487_v47  ;;  %830 = vmatprep.subr.bf16.mxu0 %v1590_v40 }
  0xf7   : > { %v486_v51 = vsel %vm454_vm2, %v430_v46, %v470_v49 }
  0xf8   : > { %v495_v39 = vpack.c.bf16 %v486_v51, %v485_v38  ;;  %1550 = vmatpush1.bf16.msra.mxu1 %v1585_v52 }
  0xf9   : > { %1543 = vmatprep.subr.bf16.mxu1 %v1590_v40  ;;  %831 = vmatpush1.bf16.msra.mxu0 %v1588_v53 }
  0xfa   : > { %1533 = vmatprep.mubr.msk.bf16.mxu1 %vm533_vm6, %v495_v39  ;;  %832 = vmatprep.subr.bf16.mxu0 %v1593_v54 }
  0xfb   : > { %1534 = vmatmul.mubr.msk.bf16.gmra.mxu1 %vm533_vm6, %v496_v50 }
  0xfc   : > { %1551 = vmatpush1.bf16.msra.mxu1 %v1588_v53  ;;  %900 = vmatprep.mubr.bf16.mxu1 %v1602_v56 }
  0xfd   : > { %1544 = vmatprep.subr.bf16.mxu1 %v1593_v54  ;;  %833 = vmatpush1.bf16.msra.mxu0 %v1591_v55 }
 0x100   : > { %1552 = vmatpush1.bf16.msra.mxu1 %v1591_v55 }
 0x1a3   : > { %v1523_v57 = vpop.f32.mrf.mxu1 }
 0x1a4   : > { %v601_v5 = vadd.f32 %v1523_v57, %v1818_v58 }
 0x1a5   : > { %v592_v59 = vpop.f32.mrf.mxu1 }
 0x1a6   : > { %v593_v60 = vadd.f32 %v1818_v58, %v592_v59  ;;  %v673_v12 = vmul.f32 0.01, %v601_v5  ;;  %vm657_vm6 = vcmp.gt.f32.partialorder %v601_v5, 0.0 }
 0x1a7   : > { %v1524_v61 = vpop.f32.mrf.mxu1 }
 0x1a8   : > { %v671_v63 = vmul.f32 0.01, %v593_v60  ;;  %vm655_vm3 = vcmp.gt.f32.partialorder %v593_v60, 0.0  ;;  %v604_v2 = vadd.f32 %v1524_v61, %v1818_v58  ;;  %v689_v19 = vsel %vm657_vm6, %v601_v5, %v673_v12 }
 0x1a9   : > { %v595_v62 = vpop.f32.mrf.mxu1  ;;  %v1845_v5 = vstv %s1449_s10 }
 0x1aa   : > { %v596_v0 = vadd.f32 %v1818_v58, %v595_v62  ;;  %v687_v6 = vsel %vm655_vm3, %v593_v60, %v671_v63  ;;  %v674_v10 = vmul.f32 0.01, %v604_v2  ;;  %vm658_vm5 = vcmp.gt.f32.partialorder %v604_v2, 0.0 }
 0x1ab   : > { %v1527_v1 = vpop.f32.mrf.mxu1 }
 0x1ac   : > { %vm656_vm4 = vcmp.gt.f32.partialorder %v596_v0, 0.0  ;;  %v672_v3 = vmul.f32 0.01, %v596_v0  ;;  %v690_v16 = vsel %vm658_vm5, %v604_v2, %v674_v10  ;;  %v617_v33 = vadd.f32 %v1527_v1, %v1818_v58 }
 0x1ad   : > { %v608_v4 = vpop.f32.mrf.mxu1  ;;  %v704_v21 = vpack.c.bf16 %v690_v16, %v689_v19 }
 0x1ae   : > { %v688_v7 = vsel %vm656_vm4, %v596_v0, %v672_v3  ;;  %v609_v18 = vadd.f32 %v1818_v58, %v608_v4  ;;  %v677_v37 = vmul.f32 0.01, %v617_v33  ;;  %vm661_vm12 = vcmp.gt.f32.partialorder %v617_v33, 0.0 }
 0x1af   : > { %v703_v8 = vpack.c.bf16 %v688_v7, %v687_v6  ;;  %v1528_v9 = vpop.f32.mrf.mxu1  ;;  %v728_v3 = vlaneseq }
 0x1b0   : > { %v675_v26 = vmul.f32 0.01, %v609_v18  ;;  %vm659_vm10 = vcmp.gt.f32.partialorder %v609_v18, 0.0  ;;  %v620_v28 = vadd.f32 %v1528_v9, %v1818_v58  ;;  %v693_v39 = vsel %vm661_vm12, %v617_v33, %v677_v37 }
 0x1b1   : > { %v611_v11 = vpop.f32.mrf.mxu1  ;;  %851 = vmatmul.mubr.bf16.vlgmr.msra.gmra.mxu0 %v703_v8  ;;  %v1843_v4 = vshrl.u32 %v728_v3, 7 }
 0x1b2   : > { %860 = vmatprep.mubr.bf16.mxu0 %v1602_v56  ;;  %v612_v14 = vadd.f32 %v1818_v58, %v611_v11  ;;  %v691_v43 = vsel %vm659_vm10, %v609_v18, %v675_v26  ;;  %v678_v44 = vmul.f32 0.01, %v620_v28  ;;  %vm662_vm11 = vcmp.gt.f32.partialorder %v620_v28, 0.0 }
 0x1b3   : > { %v1531_v13 = vpop.f32.mrf.mxu1  ;;  %v1062_v6 = vadd.s32 8, %v1843_v4  ;;  %v1064_v7 = vadd.s32 24, %v1843_v4  ;;  %v1071_v8 = vadd.s32 80, %v1843_v4  ;;  %v1078_v9 = vadd.s32 %v1845_v5, %v1843_v4 }
 0x1b4   : > { %v633_v15 = vadd.f32 %v1531_v13, %v1818_v58  ;;  %v676_v22 = vmul.f32 0.01, %v612_v14  ;;  %vm660_vm7 = vcmp.gt.f32.partialorder %v612_v14, 0.0  ;;  %v694_v48 = vsel %vm662_vm11, %v620_v28, %v678_v44 }
 0x1b5   : > { %v624_v17 = vpop.f32.mrf.mxu1  ;;  %v706_v54 = vpack.c.bf16 %v694_v48, %v693_v39  ;;  %v1065_v10 = vadd.s32 32, %v1843_v4  ;;  %v730_v11 = vsub.s32 0, %v1843_v4  ;;  %v1079_v12 = vadd.s32 %v1845_v5, %v1062_v6 }
 0x1b6   : > { %v681_v23 = vmul.f32 0.01, %v633_v15  ;;  %vm665_vm8 = vcmp.gt.f32.partialorder %v633_v15, 0.0  ;;  %v692_v32 = vsel %vm660_vm7, %v612_v14, %v676_v22  ;;  %v625_v41 = vadd.f32 %v1818_v58, %v624_v17 }
 0x1b7   : > { %v1532_v20 = vpop.f32.mrf.mxu1  ;;  %v705_v45 = vpack.c.bf16 %v692_v32, %v691_v43  ;;  %v1072_v13 = vadd.s32 88, %v1843_v4  ;;  %v1066_v14 = vadd.s32 40, %v1843_v4  ;;  %v734_v17 = vsub.s32 1, %v1843_v4 }
 0x1b8   : > { %v636_v24 = vadd.f32 %v1532_v20, %v1818_v58  ;;  %v697_v30 = vsel %vm665_vm8, %v633_v15, %v681_v23  ;;  %v679_v60 = vmul.f32 0.01, %v625_v41  ;;  %vm663_vm1 = vcmp.gt.f32.partialorder %v625_v41, 0.0  ;;  %v1408_v15 = vld [vmem:[%s2110_s4 + $0x2] ss:$4 sm:$0x3] }
 0x1b9   : > { %v627_v25 = vpop.f32.mrf.mxu1  ;;  %861 = vmatmul.mubr.bf16.gmra.mxu0 %v704_v21  ;;  %v1081_v18 = vadd.s32 %v1845_v5, %v1064_v7  ;;  %v1088_v19 = vadd.s32 %v1845_v5, %v1071_v8  ;;  %vm1094_vm3 = vcmp.lt.s32.totalorder %v1078_v9, 200  ;;  %v1082_v20 = vadd.s32 %v1845_v5, %v1065_v10 }
 0x1ba   : > { %vm666_vm9 = vcmp.gt.f32.partialorder %v636_v24, 0.0  ;;  %v682_v27 = vmul.f32 0.01, %v636_v24  ;;  %870 = vmatprep.mubr.bf16.mxu0 %v1602_v56  ;;  %v628_v49 = vadd.f32 %v1818_v58, %v627_v25  ;;  %v695_v63 = vsel %vm663_vm1, %v625_v41, %v679_v60 }
 0x1bb   : > { %v1535_v29 = vpop.f32.mrf.mxu1  ;;  %v1866_v21 = vrot.slane %v1408_v15, %v730_v11  ;;  %vm1095_vm4 = vcmp.lt.s32.totalorder %v1079_v12, 200  ;;  %v1089_v22 = vadd.s32 %v1845_v5, %v1072_v13  ;;  %v1083_v23 = vadd.s32 %v1845_v5, %v1066_v14 }
 0x1bc   : > { %v698_v31 = vsel %vm666_vm9, %v636_v24, %v682_v27  ;;  %v649_v52 = vadd.f32 %v1535_v29, %v1818_v58  ;;  %v680_v57 = vmul.f32 0.01, %v628_v49  ;;  %vm664_vm15 = vcmp.gt.f32.partialorder %v628_v49, 0.0 }
 0x1bd   : > { %v708_v34 = vpack.c.bf16 %v698_v31, %v697_v30  ;;  %v640_v35 = vpop.f32.mrf.mxu1  ;;  %v1603_v24 = vmov 0.0   ;;  %v1873_v26 = vrot.slane %v1408_v15, %v734_v17  ;;  %vm1097_vm6 = vcmp.lt.s32.totalorder %v1081_v18, 200 }
 0x1be   : > { %v641_v42 = vadd.f32 %v1818_v58, %v640_v35  ;;  %v685_v61 = vmul.f32 0.01, %v649_v52  ;;  %vm669_vm2 = vcmp.gt.f32.partialorder %v649_v52, 0.0  ;;  %v1871_v25 = vsel %vm1094_vm3, 1.0, %v1603_v24 }
 0x1bf   : > { %v1536_v36 = vpop.f32.mrf.mxu1  ;;  %901 = vmatmul.mubr.bf16.vlgmr.msra.gmra.mxu1 %v708_v34  ;;  %vm1104_vm7 = vcmp.lt.s32.totalorder %v1088_v19, 200  ;;  %v1877_v28 = vsel %vm1095_vm4, 1.0, %v1603_v24  ;;  %vm1098_vm8 = vcmp.lt.s32.totalorder %v1082_v20, 200  ;;  %v1067_v29 = vadd.s32 48, %v1843_v4 }
 0x1c0   : > { %910 = vmatprep.mubr.bf16.mxu1 %v1602_v56  ;;  %v683_v47 = vmul.f32 0.01, %v641_v42  ;;  %vm667_vm13 = vcmp.gt.f32.partialorder %v641_v42, 0.0  ;;  %v652_v50 = vadd.f32 %v1536_v36, %v1818_v58  ;;  %v701_v0 = vsel %vm669_vm2, %v649_v52, %v685_v61 }
 0x1c1   : > { %v643_v46 = vpop.f32.mrf.mxu1  ;;  %871 = vmatmul.mubr.bf16.gmra.mxu0 %v705_v45  ;;  %v1073_v30 = vadd.s32 96, %v1843_v4  ;;  %vm1105_vm9 = vcmp.lt.s32.totalorder %v1089_v22, 200  ;;  %vm1099_vm10 = vcmp.lt.s32.totalorder %v1083_v23, 200  ;;  %v1886_v34 = vsel %vm1097_vm6, 1.0, %v1603_v24 }
 0x1c2   : > { %v644_v38 = vadd.f32 %v1818_v58, %v643_v46  ;;  %880 = vmatprep.mubr.bf16.mxu0 %v1602_v56  ;;  %v699_v40 = vsel %vm667_vm13, %v641_v42, %v683_v47  ;;  %v686_v59 = vmul.f32 0.01, %v652_v50  ;;  %vm670_vm0 = vcmp.gt.f32.partialorder %v652_v50, 0.0 }
 0x1c3   : > { %v696_v58 = vsel %vm664_vm15, %v628_v49, %v680_v57  ;;  %v1889_v35 = vsel %vm1104_vm7, 1.0, %v1603_v24  ;;  %v1068_v42 = vadd.s32 56, %v1843_v4  ;;  %v1074_v43 = vadd.s32 104, %v1843_v4 }
 0x1c4   : > { %vm668_vm14 = vcmp.gt.f32.partialorder %v644_v38, 0.0  ;;  %v684_v51 = vmul.f32 0.01, %v644_v38  ;;  %v702_v62 = vsel %vm670_vm0, %v652_v50, %v686_v59  ;;  %v707_v1 = vpack.c.bf16 %v696_v58, %v695_v63 }
 0x1c5   : > { %v710_v2 = vpack.c.bf16 %v702_v62, %v701_v0  ;;  %v1901_v45 = vsel %vm1098_vm8, 1.0, %v1603_v24  ;;  %v1904_v46 = vsel %vm1105_vm9, 1.0, %v1603_v24  ;;  %v1907_v47 = vsel %vm1099_vm10, 1.0, %v1603_v24 }
 0x1c6   : > { %v700_v53 = vsel %vm668_vm14, %v644_v38, %v684_v51  ;;  %v1084_v38 = vadd.s32 %v1845_v5, %v1067_v29  ;;  %v1090_v48 = vadd.s32 %v1845_v5, %v1073_v30  ;;  %v1085_v41 = vadd.s32 %v1845_v5, %v1068_v42 }
 0x1c7   : > { %v709_v55 = vpack.c.bf16 %v700_v53, %v699_v40  ;;  %v1091_v52 = vadd.s32 %v1845_v5, %v1074_v43  ;;  %v1069_v40 = vadd.s32 64, %v1843_v4  ;;  %v1075_v53 = vadd.s32 112, %v1843_v4 }
 0x1c8   : > { %vm1100_vm14 = vcmp.lt.s32.totalorder %v1084_v38, 200  ;;  %vm1106_vm15 = vcmp.lt.s32.totalorder %v1090_v48, 200  ;;  %v1070_v60 = vadd.s32 72, %v1843_v4  ;;  %v1076_v61 = vadd.s32 120, %v1843_v4 }
 0x1c9   : > { %881 = vmatmul.mubr.bf16.gmra.mxu0 %v706_v54  ;;  %911 = vmatmul.mubr.bf16.gmra.mxu1 %v709_v55  ;;  %vm1101_vm1 = vcmp.lt.s32.totalorder %v1085_v41, 200  ;;  %vm1107_vm2 = vcmp.lt.s32.totalorder %v1091_v52, 200  ;;  %v1929_v7 = vsel %vm1100_vm14, 1.0, %v1603_v24  ;;  %v1933_v8 = vsel %vm1106_vm15, 1.0, %v1603_v24 }
 0x1ca   : > { %890 = vmatprep.mubr.bf16.mxu0 %v1602_v56  ;;  %920 = vmatprep.mubr.bf16.mxu1 %v1602_v56  ;;  %v1063_v56 = vadd.s32 16, %v1843_v4  ;;  %v1087_v9 = vadd.s32 %v1845_v5, %v1070_v60  ;;  %v1093_v10 = vadd.s32 %v1845_v5, %v1076_v61  ;;  %v1945_v17 = vsel %vm1107_vm2, 1.0, %v1603_v24 }
 0x1cc   : > { %v1080_v16 = vadd.s32 %v1845_v5, %v1063_v56  ;;  %vm1103_vm8 = vcmp.lt.s32.totalorder %v1087_v9, 200  ;;  %vm1109_vm9 = vcmp.lt.s32.totalorder %v1093_v10, 200 }
 0x1ce   : > { %vm1096_vm5 = vcmp.lt.s32.totalorder %v1080_v16, 200  ;;  %v1941_v16 = vsel %vm1101_vm1, 1.0, %v1603_v24 }
 0x1cf   : > { %v1883_v32 = vsel %vm1096_vm5, 1.0, %v1603_v24 }
 0x1d1   : > { %891 = vmatmul.mubr.bf16.gmra.mxu0 %v707_v1  ;;  %921 = vmatmul.mubr.bf16.gmra.mxu1 %v710_v2  ;;  %v1086_v1 = vadd.s32 %v1845_v5, %v1069_v40  ;;  %v1092_v2 = vadd.s32 %v1845_v5, %v1075_v53 }
 0x1d3   : > { %vm1102_vm5 = vcmp.lt.s32.totalorder %v1086_v1, 200  ;;  %vm1108_vm6 = vcmp.lt.s32.totalorder %v1092_v2, 200 }
 0x271   : > { %v852_v27 = vpop.f32.mrf.mxu0 }
 0x272   : > { %v853_v31 = vadd.f32 %v852_v27, %v1866_v21 }
 0x273   : > { %v854_v33 = vpop.f32.mrf.mxu0 }
 0x274   : > { %vm931_vm11 = vcmp.gt.f32.partialorder %v853_v31, 0.0  ;;  %v963_v44 = vmul.f32 0.01, %v853_v31  ;;  %v855_v36 = vadd.f32 %v854_v33, %v1873_v26 }
 0x275   : > { %v856_v37 = vpop.f32.mrf.mxu0 }
 0x276   : > { %v995_v49 = vsel %vm931_vm11, %v853_v31, %v963_v44  ;;  %vm932_vm12 = vcmp.gt.f32.partialorder %v855_v36, 0.0  ;;  %v964_v50 = vmul.f32 0.01, %v855_v36  ;;  %v857_v51 = vadd.f32 %v856_v37, %v1866_v21 }
 0x277   : > { %1027 = vst [vmem:[%s1896_s15] sm:$0xff] %v995_v49  ;;  %v858_v39 = vpop.f32.mrf.mxu0  ;;  %v1142_v20 = vmul.f32 %v1871_v25, %v995_v49  ;;  %v1957_v44 = vsel %vm1102_vm5, 1.0, %v1603_v24 }
 0x278   : > { %v996_v54 = vsel %vm932_vm12, %v855_v36, %v964_v50  ;;  %vm933_vm13 = vcmp.gt.f32.partialorder %v857_v51, 0.0  ;;  %v965_v55 = vmul.f32 0.01, %v857_v51  ;;  %v859_v57 = vadd.f32 %v858_v39, %v1873_v26 }
 0x279   : > { %1028 = vst [vmem:[%s1896_s15 + $0x8] sm:$0xff] %v996_v54  ;;  %v862_v59 = vpop.f32.mrf.mxu0  ;;  %v1143_v33 = vmul.f32 %v1871_v25, %v996_v54  ;;  %v1961_v36 = vsel %vm1108_vm6, 1.0, %v1603_v24  ;;  %v1216_v49 = vmul.f32 %v1142_v20, %v1142_v20  ;;  %v1971_v39 = vsel %vm1109_vm9, 1.0, %v1603_v24 }
 0x27a   : > { %v997_v58 = vsel %vm933_vm13, %v857_v51, %v965_v55  ;;  %vm934_vm0 = vcmp.gt.f32.partialorder %v859_v57, 0.0  ;;  %v966_v62 = vmul.f32 0.01, %v859_v57  ;;  %v863_v63 = vadd.f32 %v862_v59, %v1866_v21 }
 0x27b   : > { %1029 = vst [vmem:[%s1896_s15 + $0x10] sm:$0xff] %v997_v58  ;;  %v864_v0 = vpop.f32.mrf.mxu0  ;;  %v1144_v22 = vmul.f32 %v1877_v28, %v997_v58  ;;  %v1967_v51 = vsel %vm1103_vm8, 1.0, %v1603_v24  ;;  %v1217_v53 = vmul.f32 %v1143_v33, %v1143_v33 }
 0x27c   : > { %v998_v3 = vsel %vm934_vm0, %v859_v57, %v966_v62  ;;  %vm935_vm3 = vcmp.gt.f32.partialorder %v863_v63, 0.0  ;;  %v967_v6 = vmul.f32 0.01, %v863_v63  ;;  %v865_v56 = vadd.f32 %v864_v0, %v1873_v26 }
 0x27d   : > { %1030 = vst [vmem:[%s1896_s15 + $0x18] sm:$0xff] %v998_v3  ;;  %v866_v4 = vpop.f32.mrf.mxu0  ;;  %v1145_v42 = vmul.f32 %v1877_v28, %v998_v3  ;;  %v1218_v25 = vmul.f32 %v1144_v22, %v1144_v22  ;;  %v1174_v54 = vadd.f32 %v1144_v22, %v1142_v20 }
 0x27e   : > { %v999_v11 = vsel %vm935_vm3, %v863_v63, %v967_v6  ;;  %vm936_vm4 = vcmp.gt.f32.partialorder %v865_v56, 0.0  ;;  %v968_v12 = vmul.f32 0.01, %v865_v56  ;;  %v867_v13 = vadd.f32 %v866_v4, %v1866_v21 }
 0x27f   : > { %1031 = vst [vmem:[%s1896_s15 + $0x20] sm:$0xff] %v999_v11  ;;  %v868_v14 = vpop.f32.mrf.mxu0  ;;  %v902_v15 = vpop.f32.mrf.mxu1  ;;  %v1219_v55 = vmul.f32 %v1145_v42, %v1145_v42  ;;  %v1146_v57 = vmul.f32 %v1883_v32, %v999_v11  ;;  %v1248_v58 = vadd.f32 %v1218_v25, %v1216_v49  ;;  %v1195_v62 = vadd.f32 %v1145_v42, %v1143_v33 }
 0x280   : > { %v1000_v5 = vsel %vm936_vm4, %v865_v56, %v968_v12  ;;  %vm937_vm7 = vcmp.gt.f32.partialorder %v867_v13, 0.0  ;;  %v969_v18 = vmul.f32 0.01, %v867_v13  ;;  %v869_v19 = vadd.f32 %v868_v14, %v1873_v26 }
 0x281   : > { %1032 = vst [vmem:[%s1896_s15 + $0x28] sm:$0xff] %v1000_v5  ;;  %v872_v23 = vpop.f32.mrf.mxu0  ;;  %v904_v27 = vpop.f32.mrf.mxu1  ;;  %v903_v31 = vadd.f32 %v902_v15, %v1866_v21  ;;  %v1147_v63 = vmul.f32 %v1883_v32, %v1000_v5  ;;  %v1269_v4 = vadd.f32 %v1219_v55, %v1217_v53  ;;  %v1220_v9 = vmul.f32 %v1146_v57, %v1146_v57 }
 0x282   : > { %v1001_v29 = vsel %vm937_vm7, %v867_v13, %v969_v18  ;;  %vm938_vm10 = vcmp.gt.f32.partialorder %v869_v19, 0.0  ;;  %v970_v30 = vmul.f32 0.01, %v869_v19  ;;  %v873_v48 = vadd.f32 %v872_v23, %v1866_v21 }
 0x283   : > { %1033 = vst [vmem:[%s1896_s15 + $0x30] sm:$0xff] %v1001_v29  ;;  %v874_v43 = vpop.f32.mrf.mxu0  ;;  %vm951_vm11 = vcmp.gt.f32.partialorder %v903_v31, 0.0  ;;  %v983_v38 = vmul.f32 0.01, %v903_v31  ;;  %v906_v28 = vpop.f32.mrf.mxu1  ;;  %v905_v40 = vadd.f32 %v904_v27, %v1873_v26  ;;  %v1148_v10 = vmul.f32 %v1886_v34, %v1001_v29 }
 0x284   : > { %v1002_v37 = vsel %vm938_vm10, %v869_v19, %v970_v30  ;;  %vm939_vm12 = vcmp.gt.f32.partialorder %v873_v48, 0.0  ;;  %v971_v52 = vmul.f32 0.01, %v873_v48  ;;  %v875_v24 = vadd.f32 %v874_v43, %v1873_v26 }
 0x285   : > { %1034 = vst [vmem:[%s1896_s15 + $0x38] sm:$0xff] %v1002_v37  ;;  %v876_v50 = vpop.f32.mrf.mxu0  ;;  %v1015_v41 = vsel %vm951_vm11, %v903_v31, %v983_v38  ;;  %vm952_vm13 = vcmp.gt.f32.partialorder %v905_v40, 0.0  ;;  %v984_v61 = vmul.f32 0.01, %v905_v40  ;;  %v907_v0 = vadd.f32 %v906_v28, %v1866_v21  ;;  %v908_v1 = vpop.f32.mrf.mxu1 }
 0x286   : > { %1047 = vst [vmem:[%s1896_s15 + $0xa0] sm:$0xff] %v1015_v41  ;;  %v1003_v60 = vsel %vm939_vm12, %v873_v48, %v971_v52  ;;  %vm940_vm14 = vcmp.gt.f32.partialorder %v875_v24, 0.0  ;;  %v972_v6 = vmul.f32 0.01, %v875_v24  ;;  %v877_v56 = vadd.f32 %v876_v50, %v1866_v21 }
 0x287   : > { %v878_v59 = vpop.f32.mrf.mxu0  ;;  %1035 = vst [vmem:[%s1896_s15 + $0x40] sm:$0xff] %v1003_v60  ;;  %v1980_v3 = vsel %vm952_vm13, %v905_v40, %v984_v61  ;;  %vm953_vm15 = vcmp.gt.f32.partialorder %v907_v0, 0.0  ;;  %v985_v12 = vmul.f32 0.01, %v907_v0  ;;  %v1175_v14 = vadd.f32 %v1174_v54, %v1146_v57 }
 0x288   : > { %1048 = vst [vmem:[%s1896_s15 + $0xa8] sm:$0xff] %v1980_v3  ;;  %v1004_v11 = vsel %vm940_vm14, %v875_v24, %v972_v6  ;;  %vm941_vm0 = vcmp.gt.f32.partialorder %v877_v56, 0.0  ;;  %v973_v13 = vmul.f32 0.01, %v877_v56  ;;  %v1221_v15 = vmul.f32 %v1147_v63, %v1147_v63 }
 0x289   : > { %v882_v2 = vpop.f32.mrf.mxu0  ;;  %v912_v32 = vpop.f32.mrf.mxu1  ;;  %v1149_v5 = vmul.f32 %v1886_v34, %v1002_v37  ;;  %1036 = vst [vmem:[%s1896_s15 + $0x48] sm:$0xff] %v1004_v11  ;;  %v909_v18 = vadd.f32 %v908_v1, %v1873_v26  ;;  %v1989_v20 = vsel %vm953_vm15, %v907_v0, %v985_v12  ;;  %v879_v23 = vadd.f32 %v878_v59, %v1873_v26 }
 0x28a   : > { %v1005_v22 = vsel %vm941_vm0, %v877_v56, %v973_v13  ;;  %v883_v27 = vadd.f32 %v882_v2, %v1866_v21  ;;  %v1249_v29 = vadd.f32 %v1248_v58, %v1220_v9  ;;  %v1196_v30 = vadd.f32 %v1195_v62, %v1147_v63  ;;  %1049 = vst [vmem:[%s1896_s15 + $0xb0] sm:$0xff] %v1989_v20 }
 0x28b   : > { %v884_v19 = vpop.f32.mrf.mxu0  ;;  %v1222_v31 = vmul.f32 %v1148_v10, %v1148_v10  ;;  %v1150_v33 = vmul.f32 %v1901_v45, %v1003_v60  ;;  %1037 = vst [vmem:[%s1896_s15 + $0x50] sm:$0xff] %v1005_v22  ;;  %v914_v34 = vpop.f32.mrf.mxu1  ;;  %vm954_vm1 = vcmp.gt.f32.partialorder %v909_v18, 0.0  ;;  %v986_v42 = vmul.f32 0.01, %v909_v18 }
 0x28c   : > { %vm942_vm2 = vcmp.gt.f32.partialorder %v879_v23, 0.0  ;;  %v974_v43 = vmul.f32 0.01, %v879_v23  ;;  %v1270_v37 = vadd.f32 %v1269_v4, %v1221_v15  ;;  %v1176_v38 = vadd.f32 %v1175_v14, %v1148_v10 }
 0x28d   : > { %v1223_v48 = vmul.f32 %v1149_v5, %v1149_v5  ;;  %v1998_v49 = vmul.f32 %v1889_v35, %v1015_v41  ;;  %v886_v25 = vpop.f32.mrf.mxu0  ;;  %v2000_v28 = vsel %vm954_vm1, %v909_v18, %v986_v42  ;;  %vm943_vm3 = vcmp.gt.f32.partialorder %v883_v27, 0.0  ;;  %v916_v57 = vpop.f32.mrf.mxu1 }
 0x28e   : > { %v1006_v50 = vsel %vm942_vm2, %v879_v23, %v974_v43  ;;  %v975_v52 = vmul.f32 0.01, %v883_v27  ;;  %v1250_v40 = vadd.f32 %v1249_v29, %v1222_v31  ;;  %v1197_v53 = vadd.f32 %v1196_v30, %v1149_v5  ;;  %1050 = vst [vmem:[%s1896_s15 + $0xb8] sm:$0xff] %v2000_v28 }
 0x28f   : > { %v1151_v54 = vmul.f32 %v1901_v45, %v1004_v11  ;;  %1038 = vst [vmem:[%s1896_s15 + $0x58] sm:$0xff] %v1006_v50  ;;  %v913_v55 = vadd.f32 %v912_v32, %v1866_v21  ;;  %v1224_v59 = vmul.f32 %v1150_v33, %v1150_v33  ;;  %v885_v60 = vadd.f32 %v884_v19, %v1873_v26  ;;  %v888_v63 = vpop.f32.mrf.mxu0  ;;  %v918_v4 = vpop.f32.mrf.mxu1 }
 0x290   : > { %v1007_v41 = vsel %vm943_vm3, %v883_v27, %v975_v52  ;;  %v915_v61 = vadd.f32 %v914_v34, %v1873_v26  ;;  %v1271_v24 = vadd.f32 %v1270_v37, %v1223_v48  ;;  %v2011_v58 = vmul.f32 %v1998_v49, %v1998_v49 }
 0x291   : > { %v1177_v62 = vadd.f32 %v1176_v38, %v1150_v33  ;;  %1039 = vst [vmem:[%s1896_s15 + $0x60] sm:$0xff] %v1007_v41  ;;  %v887_v45 = vadd.f32 %v886_v25, %v1866_v21  ;;  %vm955_vm4 = vcmp.gt.f32.partialorder %v913_v55, 0.0  ;;  %v987_v0 = vmul.f32 0.01, %v913_v55  ;;  %v922_v30 = vpop.f32.mrf.mxu1 }
 0x292   : > { %vm944_vm5 = vcmp.gt.f32.partialorder %v885_v60, 0.0  ;;  %v976_v1 = vmul.f32 0.01, %v885_v60  ;;  %v2017_v2 = vmul.f32 %v1889_v35, %v1980_v3  ;;  %v1225_v6 = vmul.f32 %v1151_v54, %v1151_v54  ;;  %v892_v35 = vpop.f32.mrf.mxu0 }
 0x293   : > { %v1152_v56 = vmul.f32 %v1907_v47, %v1005_v22  ;;  %vm956_vm6 = vcmp.gt.f32.partialorder %v915_v61, 0.0  ;;  %v1251_v9 = vadd.f32 %v1250_v40, %v1224_v59  ;;  %v1019_v10 = vsel %vm955_vm4, %v913_v55, %v987_v0 }
 0x294   : > { %v1008_v32 = vsel %vm944_vm5, %v885_v60, %v976_v1  ;;  %v988_v11 = vmul.f32 0.01, %v915_v61  ;;  %v1153_v12 = vmul.f32 %v1907_v47, %v1006_v50  ;;  %v1154_v13 = vmul.f32 %v1929_v7, %v1007_v41  ;;  %1051 = vst [vmem:[%s1896_s15 + $0xc0] sm:$0xff] %v1019_v10  ;;  %v894_v43 = vpop.f32.mrf.mxu0 }
 0x295   : > { %1040 = vst [vmem:[%s1896_s15 + $0x68] sm:$0xff] %v1008_v32  ;;  %vm945_vm7 = vcmp.gt.f32.partialorder %v887_v45, 0.0  ;;  %v977_v14 = vmul.f32 0.01, %v887_v45  ;;  %v917_v15 = vadd.f32 %v916_v57, %v1866_v21  ;;  %v889_v5 = vadd.f32 %v888_v63, %v1873_v26 }
 0x296   : > { %v2024_v3 = vsel %vm956_vm6, %v915_v61, %v988_v11  ;;  %v919_v18 = vadd.f32 %v918_v4, %v1873_v26  ;;  %v1198_v19 = vadd.f32 %v1197_v53, %v1151_v54  ;;  %v1272_v22 = vadd.f32 %v1271_v24, %v1225_v6  ;;  %v924_v54 = vpop.f32.mrf.mxu1  ;;  %v896_v60 = vpop.f32.mrf.mxu0 }
 0x297   : > { %v2031_v47 = vmul.f32 %v1904_v46, %v1989_v20  ;;  %v1226_v23 = vmul.f32 %v1152_v56, %v1152_v56  ;;  %1052 = vst [vmem:[%s1896_s15 + $0xc8] sm:$0xff] %v2024_v3  ;;  %v1009_v27 = vsel %vm945_vm7, %v887_v45, %v977_v14  ;;  %vm957_vm8 = vcmp.gt.f32.partialorder %v917_v15, 0.0 }
 0x298   : > { %v989_v29 = vmul.f32 0.01, %v917_v15  ;;  %vm946_vm9 = vcmp.gt.f32.partialorder %v889_v5, 0.0  ;;  %v1227_v31 = vmul.f32 %v1153_v12, %v1153_v12  ;;  %v1228_v33 = vmul.f32 %v1154_v13, %v1154_v13  ;;  %1041 = vst [vmem:[%s1896_s15 + $0x70] sm:$0xff] %v1009_v27 }
 0x299   : > { %v1155_v34 = vmul.f32 %v1929_v7, %v1008_v32  ;;  %v978_v42 = vmul.f32 0.01, %v889_v5  ;;  %vm958_vm10 = vcmp.gt.f32.partialorder %v919_v18, 0.0  ;;  %v990_v20 = vmul.f32 0.01, %v919_v18 }
 0x29a   : > { %v2037_v37 = vsel %vm957_vm8, %v917_v15, %v989_v29  ;;  %v893_v38 = vadd.f32 %v892_v35, %v1866_v21  ;;  %v2042_v48 = vmul.f32 %v2031_v47, %v2031_v47  ;;  %v1178_v25 = vadd.f32 %v1177_v62, %v1152_v56 }
 0x29b   : > { %v1252_v50 = vadd.f32 %v1251_v9, %v1226_v23  ;;  %1053 = vst [vmem:[%s1896_s15 + $0xd0] sm:$0xff] %v2037_v37  ;;  %v1010_v7 = vsel %vm946_vm9, %v889_v5, %v978_v42  ;;  %v1199_v52 = vadd.f32 %v1198_v19, %v1153_v12  ;;  %v2048_v40 = vsel %vm958_vm10, %v919_v18, %v990_v20  ;;  %v926_v9 = vpop.f32.mrf.mxu1 }
 0x29c   : > { %1042 = vst [vmem:[%s1896_s15 + $0x78] sm:$0xff] %v1010_v7  ;;  %vm947_vm11 = vcmp.gt.f32.partialorder %v893_v38, 0.0  ;;  %v979_v53 = vmul.f32 0.01, %v893_v38  ;;  %v1273_v55 = vadd.f32 %v1272_v22, %v1227_v31  ;;  %v1179_v57 = vadd.f32 %v1178_v25, %v1154_v13  ;;  %1054 = vst [vmem:[%s1896_s15 + $0xd8] sm:$0xff] %v2048_v40  ;;  %v898_v13 = vpop.f32.mrf.mxu0 }
 0x29d   : > { %v1156_v59 = vmul.f32 %v1941_v16, %v1009_v27  ;;  %v923_v41 = vadd.f32 %v922_v30, %v1866_v21  ;;  %v1253_v61 = vadd.f32 %v1252_v50, %v1228_v33  ;;  %v1229_v24 = vmul.f32 %v1155_v34, %v1155_v34  ;;  %v928_v29 = vpop.f32.mrf.mxu1 }
 0x29e   : > { %v1011_v62 = vsel %vm947_vm11, %v893_v38, %v979_v53  ;;  %v895_v45 = vadd.f32 %v894_v43, %v1873_v26  ;;  %v2056_v63 = vmul.f32 %v1933_v8, %v1019_v10  ;;  %v1200_v0 = vadd.f32 %v1199_v52, %v1155_v34 }
 0x29f   : > { %1043 = vst [vmem:[%s1896_s15 + $0x80] sm:$0xff] %v1011_v62  ;;  %vm959_vm12 = vcmp.gt.f32.partialorder %v923_v41, 0.0  ;;  %v991_v1 = vmul.f32 0.01, %v923_v41  ;;  %v1158_v6 = vmul.f32 %v1957_v44, %v1011_v62  ;;  %v925_v4 = vadd.f32 %v924_v54, %v1873_v26 }
 0x2a0   : > { %vm948_vm13 = vcmp.gt.f32.partialorder %v895_v45, 0.0  ;;  %v980_v56 = vmul.f32 0.01, %v895_v45  ;;  %v1230_v32 = vmul.f32 %v1156_v59, %v1156_v59  ;;  %v1157_v11 = vmul.f32 %v1941_v16, %v1010_v7 }
 0x2a1   : > { %v1023_v12 = vsel %vm959_vm12, %v923_v41, %v991_v1  ;;  %v897_v10 = vadd.f32 %v896_v60, %v1866_v21  ;;  %v1274_v14 = vadd.f32 %v1273_v55, %v1229_v24  ;;  %vm960_vm14 = vcmp.gt.f32.partialorder %v925_v4, 0.0 }
 0x2a2   : > { %1055 = vst [vmem:[%s1896_s15 + $0xe0] sm:$0xff] %v1023_v12  ;;  %v1012_v35 = vsel %vm948_vm13, %v895_v45, %v980_v56  ;;  %v992_v15 = vmul.f32 0.01, %v925_v4  ;;  %v1180_v5 = vadd.f32 %v1179_v57, %v1156_v59  ;;  %v1232_v22 = vmul.f32 %v1158_v6, %v1158_v6 }
 0x2a3   : > { %1044 = vst [vmem:[%s1896_s15 + $0x88] sm:$0xff] %v1012_v35  ;;  %v1159_v18 = vmul.f32 %v1957_v44, %v1012_v35  ;;  %vm949_vm15 = vcmp.gt.f32.partialorder %v897_v10, 0.0  ;;  %v981_v19 = vmul.f32 0.01, %v897_v10  ;;  %v927_v16 = vadd.f32 %v926_v9, %v1866_v21 }
 0x2a4   : > { %v1024_v23 = vsel %vm960_vm14, %v925_v4, %v992_v15  ;;  %v899_v27 = vadd.f32 %v898_v13, %v1873_v26  ;;  %v1254_v30 = vadd.f32 %v1253_v61, %v1230_v32  ;;  %v1231_v31 = vmul.f32 %v1157_v11, %v1157_v11 }
 0x2a5   : > { %v1181_v33 = vadd.f32 %v1180_v5, %v1158_v6  ;;  %1056 = vst [vmem:[%s1896_s15 + $0xe8] sm:$0xff] %v1024_v23  ;;  %v1013_v34 = vsel %vm949_vm15, %v897_v10, %v981_v19  ;;  %vm961_vm0 = vcmp.gt.f32.partialorder %v927_v16, 0.0  ;;  %v993_v44 = vmul.f32 0.01, %v927_v16 }
 0x2a6   : > { %1045 = vst [vmem:[%s1896_s15 + $0x90] sm:$0xff] %v1013_v34  ;;  %v1160_v42 = vmul.f32 %v1967_v51, %v1013_v34  ;;  %vm950_vm1 = vcmp.gt.f32.partialorder %v899_v27, 0.0  ;;  %v1201_v43 = vadd.f32 %v1200_v0, %v1157_v11  ;;  %v1233_v20 = vmul.f32 %v1159_v18, %v1159_v18 }
 0x2a7   : > { %v982_v38 = vmul.f32 0.01, %v899_v27  ;;  %v929_v21 = vadd.f32 %v928_v29, %v1873_v26  ;;  %v1255_v25 = vadd.f32 %v1254_v30, %v1232_v22  ;;  %v1025_v52 = vsel %vm961_vm0, %v927_v16, %v993_v44 }
 0x2a8   : > { %v1182_v50 = vadd.f32 %v1181_v33, %v1160_v42  ;;  %v1234_v7 = vmul.f32 %v1160_v42, %v1160_v42  ;;  %v1275_v53 = vadd.f32 %v1274_v14, %v1231_v31  ;;  %1057 = vst [vmem:[%s1896_s15 + $0xf0] sm:$0xff] %v1025_v52  ;;  %v1202_v57 = vadd.f32 %v1201_v43, %v1159_v18 }
 0x2a9   : > { %v1014_v54 = vsel %vm950_vm1, %v899_v27, %v982_v38  ;;  %vm962_vm2 = vcmp.gt.f32.partialorder %v929_v21, 0.0  ;;  %v994_v55 = vmul.f32 0.01, %v929_v21  ;;  %v1165_v26 = vmul.f32 %v1904_v46, %v2000_v28 }
 0x2aa   : > { %v1183_v59 = vadd.f32 %v1182_v50, %v1998_v49  ;;  %v1256_v41 = vadd.f32 %v1255_v25, %v1234_v7  ;;  %1046 = vst [vmem:[%s1896_s15 + $0x98] sm:$0xff] %v1014_v54  ;;  %v1161_v60 = vmul.f32 %v1967_v51, %v1014_v54  ;;  %v1168_v61 = vmul.f32 %v1945_v17, %v2037_v37 }
 0x2ab   : > { %v1276_v24 = vadd.f32 %v1275_v53, %v1233_v20  ;;  %v1026_v62 = vsel %vm962_vm2, %v929_v21, %v994_v55  ;;  %v1237_v49 = vmul.f32 %v2017_v2, %v2017_v2  ;;  %v1240_v51 = vmul.f32 %v2056_v63, %v2056_v63 }
 0x2ac   : > { %v1184_v45 = vadd.f32 %v1183_v59, %v2031_v47  ;;  %v1257_v0 = vadd.f32 %v1256_v41, %v2011_v58  ;;  %v1203_v1 = vadd.f32 %v1202_v57, %v1161_v60  ;;  %v1235_v6 = vmul.f32 %v1161_v60, %v1161_v60  ;;  %1058 = vst [vmem:[%s1896_s15 + $0xf8] sm:$0xff] %v1026_v62 }
 0x2ad   : > { %v1167_v46 = vmul.f32 %v1933_v8, %v2024_v3  ;;  %v1170_v28 = vmul.f32 %v1961_v36, %v1023_v12  ;;  %v1239_v4 = vmul.f32 %v1165_v26, %v1165_v26  ;;  %v1242_v9 = vmul.f32 %v1168_v61, %v1168_v61 }
 0x2ae   : > { %v1258_v37 = vadd.f32 %v1257_v0, %v2042_v48  ;;  %v1185_v47 = vadd.f32 %v1184_v45, %v2056_v63  ;;  %v1204_v58 = vadd.f32 %v1203_v1, %v2017_v2  ;;  %v1277_v56 = vadd.f32 %v1276_v24, %v1235_v6 }
 0x2af   : > { %v1169_v32 = vmul.f32 %v1945_v17, %v2048_v40  ;;  %v1172_v11 = vmul.f32 %v1971_v39, %v1025_v52  ;;  %v1241_v3 = vmul.f32 %v1167_v46, %v1167_v46  ;;  %v1244_v12 = vmul.f32 %v1170_v28, %v1170_v28 }
 0x2b0   : > { %v1186_v10 = vadd.f32 %v1185_v47, %v1168_v61  ;;  %v1259_v13 = vadd.f32 %v1258_v37, %v1240_v51  ;;  %v1205_v14 = vadd.f32 %v1204_v58, %v1165_v26  ;;  %v1278_v8 = vadd.f32 %v1277_v56, %v1237_v49 }
 0x2b1   : > { %v1171_v48 = vmul.f32 %v1961_v36, %v1024_v23  ;;  %v1243_v5 = vmul.f32 %v1169_v32, %v1169_v32  ;;  %v1246_v18 = vmul.f32 %v1172_v11, %v1172_v11  ;;  %v1173_v19 = vmul.f32 %v1971_v39, %v1026_v62 }
 0x2b2   : > { %v1187_v35 = vadd.f32 %v1186_v10, %v1170_v28  ;;  %v1260_v63 = vadd.f32 %v1259_v13, %v1242_v9  ;;  %v1279_v15 = vadd.f32 %v1278_v8, %v1239_v4  ;;  %v1206_v2 = vadd.f32 %v1205_v14, %v1167_v46 }
 0x2b3   : > { %v1245_v27 = vmul.f32 %v1171_v48, %v1171_v48  ;;  %v1247_v34 = vmul.f32 %v1173_v19, %v1173_v19  ;;  %vm1290_vm3 = vcmask 1040384  }
 0x2b4   : > { %v1188_v22 = vadd.f32 %v1187_v35, %v1172_v11  ;;  %v1261_v17 = vadd.f32 %v1260_v63, %v1244_v12  ;;  %v1207_v40 = vadd.f32 %v1206_v2, %v1169_v32  ;;  %v1280_v16 = vadd.f32 %v1279_v15, %v1241_v3 }
 0x2b6   : > { %v1189_v29 = vrot.slane %v1188_v22, 4  ;;  %v1262_v30 = vadd.f32 %v1261_v17, %v1246_v18  ;;  %v1208_v31 = vadd.f32 %v1207_v40, %v1171_v48  ;;  %v1281_v33 = vadd.f32 %v1280_v16, %v1243_v5 }
 0x2b8   : > { %v1190_v36 = vadd.f32 %v1189_v29, %v1188_v22  ;;  %v1263_v23 = vrot.slane %v1262_v30, 4  ;;  %v1209_v42 = vadd.f32 %v1208_v31, %v1173_v19  ;;  %v1282_v44 = vadd.f32 %v1281_v33, %v1245_v27 }
 0x2ba   : > { %v1191_v43 = vrot.slane %v1190_v36, 2  ;;  %v1264_v20 = vadd.f32 %v1263_v23, %v1262_v30  ;;  %v1210_v38 = vrot.slane %v1209_v42, 4  ;;  %v1283_v39 = vadd.f32 %v1282_v44, %v1247_v34 }
 0x2bc   : > { %v1265_v21 = vrot.slane %v1264_v20, 2  ;;  %v1211_v25 = vadd.f32 %v1210_v38, %v1209_v42  ;;  %v1284_v50 = vrot.slane %v1283_v39, 4  ;;  %v1192_v7 = vadd.f32 %v1191_v43, %v1190_v36 }
 0x2be   : > { %v1266_v52 = vadd.f32 %v1265_v21, %v1264_v20  ;;  %v1212_v53 = vrot.slane %v1211_v25, 2  ;;  %v1285_v54 = vadd.f32 %v1284_v50, %v1283_v39  ;;  %v1193_v41 = vrot.slane %v1192_v7, 1 }
 0x2c0   : > { %v1267_v55 = vrot.slane %v1266_v52, 1  ;;  %v1213_v57 = vadd.f32 %v1212_v53, %v1211_v25  ;;  %v1286_v59 = vrot.slane %v1285_v54, 2  ;;  %v1194_v62 = vadd.f32 %v1193_v41, %v1192_v7 }
 0x2c2   : > { %v1214_v60 = vrot.slane %v1213_v57, 1  ;;  %v1287_v26 = vadd.f32 %v1286_v59, %v1285_v54  ;;  %v1268_v61 = vadd.f32 %v1267_v55, %v1266_v52 }
 0x2c4   : > { %v1288_v24 = vrot.slane %v1287_v26, 1  ;;  %v1215_v45 = vadd.f32 %v1214_v60, %v1213_v57  ;;  %v1291_v1 = vsel %vm1290_vm3, %v1194_v62, %v1268_v61 }
 0x2c6   : > { %v1289_v0 = vadd.f32 %v1288_v24, %v1287_v26 }
 0x2c8   : > { %v1292_v6 = vsel %vm1290_vm3, %v1215_v45, %v1289_v0 }
 0x2c9   : > { %v1295_v49 = vcombine.low %v1291_v1, %v1292_v6 }
 0x2cb   : > { %1466 = vst.sshfl [vmem:[%s269_s19] sm:$0x33 pattern:$0x76325410] %v1295_v49 }
 0x2cc PF: > { %s17_s21 = sadd.s32 1, %s1600_s21  }
 0x2cd   : > { %p14_p5 = scmp.ge.s32.totalorder %s17_s21, 4  }
 0x2cf   :  { %16 = sbr.rel (!%p14_p5) target bundleno = 1 (0x1), region = 83 }

// kernel: tonet_forward.3
= control target key start
LH: loop header
LB: loop body
LE: loop exit
PB: predicated region body
PF: predicated region fallthrough
CT: control target
= control target key end

     0   :  { %s911_s15 = smov 0   ;;  %s1147_s0 = inlined_call_operand.vmem [shape: f32[256,256], index: 0, kind: input, shape index: {}]   ;;  %s1148_s1 = inlined_call_operand.vmem [shape: f32[2,256], index: 1, kind: input, shape index: {}]   ;;  %s1149_s2 = inlined_call_operand.vmem [shape: bf16[256,20], index: 2, kind: input, shape index: {}]   ;;  %s1150_s3 = inlined_call_operand.vmem [shape: f32[1,20], index: 3, kind: input, shape index: {}]   ;;  %s1151_s4 = inlined_call_operand.vmem [shape: f32[256,20], index: 4, kind: output, shape index: {}]  }
   0x1 LB: > { %s679_s16 = sadd.s32 4294967295, %s884_s15   ;;  %p683_p0 = scmp.ge.s32.totalorder %s884_s15, 1  ;;  %s884_s15 = sphi %s911_s15, %s14_s15  }
   0x2   : > { %p164_p1 = scmp.lt.s32.totalorder %s884_s15, 3 }
   0x4   : > { %p165_p2 = pnand %p683_p0, %p164_p1 }
   0x5   : > { %s684_s19 = sshll.u32 (!%p165_p2), %s679_s16, 4 }
   0x6   : > { %168 = sbr.rel (%p165_p2) target bundleno = 274 (0x112), region = 36  ;;  %p192_p3 = scmp.lt.s32.totalorder (!%p165_p2), %s684_s19, 31 }
   0xb   : > { %v798_v0 = vld [vmem:[%s1149_s2 + $0x78] sm:$0xff]   ;;  %v800_v2 = vld [vmem:[%s1149_s2 + $0x70] sm:$0xff]   ;;  %v802_v4 = vld [vmem:[%s1149_s2 + $0x68] sm:$0xff]   ;;  %v241_v5 = vlaneseq  ;;  %s1153_s19 = smov (!%p192_p3, %s684_s19), 31  ;;  %vm606_vm0 = vcmask 162816  }
   0xc   : > { %v799_v1 = vld [vmem:[%s1149_s2 + $0x38] sm:$0xff]   ;;  %710 = vmatprep.subr.bf16.mxu0 %v798_v0  ;;  %774 = vmatprep.subr.bf16.mxu1 %v798_v0  ;;  %v801_v3 = vld [vmem:[%s1149_s2 + $0x30] sm:$0xff]   ;;  %v803_v6 = vld [vmem:[%s1149_s2 + $0x28] sm:$0xff]   ;;  %s709_s6 = sshll.u32 %s1153_s19, 4  ;;  %s688_s8 = sshll.u32 %s1153_s19, 3 }
   0xd   : > { %711 = vmatpush3.bf16.msra.mxu0 %v799_v1  ;;  %782 = vmatpush3.bf16.msra.mxu1 %v799_v1  ;;  %v804_v7 = vld [vmem:[%s1149_s2 + $0x60] sm:$0xff]   ;;  %v242_v8 = vshrl.u32 %v241_v5, 7  ;;  %v806_v10 = vld [vmem:[%s1149_s2 + $0x58] sm:$0xff]   ;;  %s952_s13 = scalar_lea.vmem %s1147_s0, %s709_s6  ;;  %v808_v14 = vld [vmem:[%s1149_s2 + $0x50] sm:$0xff]  }
   0xe   : > { %712 = vmatprep.subr.bf16.mxu0 %v800_v2  ;;  %775 = vmatprep.subr.bf16.mxu1 %v800_v2  ;;  %v805_v9 = vld [vmem:[%s1149_s2 + $0x20] sm:$0xff]   ;;  %v807_v13 = vld [vmem:[%s1149_s2 + $0x18] sm:$0xff]   ;;  %v206_v15 = vld [vmem:[%s952_s13 + $0x8] sm:$0xff] }
   0xf   : > { %v243_v11 = vsub.s32 0, %v242_v8  ;;  %v247_v12 = vsub.s32 1, %v242_v8  ;;  %v208_v16 = vld [vmem:[%s952_s13 + $0x18] sm:$0xff]  ;;  %v237_v17 = vld [vmem:[%s1148_s1] ss:$2 sm:$0x3] }
  0x10   : > { %v689_v18 = vld [vmem:[%s1148_s1 + $0x1] ss:$2 sm:$0x3]  ;;  %v222_v21 = vld [vmem:[%s952_s13 + $0x88] sm:$0xff]  ;;  %v224_v22 = vld [vmem:[%s952_s13 + $0x98] sm:$0xff] }
  0x11   : > { %713 = vmatpush3.bf16.msra.mxu0 %v801_v3  ;;  %783 = vmatpush3.bf16.msra.mxu1 %v801_v3  ;;  %v968_v19 = vrot.slane %v237_v17, %v243_v11  ;;  %v970_v20 = vrot.slane %v237_v17, %v247_v12  ;;  %v974_v23 = vrot.slane %v689_v18, %v243_v11  ;;  %v205_v25 = vld [vmem:[%s952_s13] sm:$0xff]  ;;  %v207_v26 = vld [vmem:[%s952_s13 + $0x10] sm:$0xff]  ;;  %v810_v33 = vld [vmem:[%s1149_s2 + $0x48] sm:$0xff]  }
  0x12   : > { %714 = vmatprep.subr.bf16.mxu0 %v802_v4  ;;  %776 = vmatprep.subr.bf16.mxu1 %v802_v4  ;;  %v976_v24 = vrot.slane %v689_v18, %v247_v12  ;;  %v221_v27 = vld [vmem:[%s952_s13 + $0x80] sm:$0xff]  ;;  %v809_v28 = vld [vmem:[%s1149_s2 + $0x10] sm:$0xff]   ;;  %v210_v37 = vld [vmem:[%s952_s13 + $0x28] sm:$0xff] }
  0x13   : > { %v252_v29 = vmul.f32 %v970_v20, %v206_v15  ;;  %v254_v30 = vmul.f32 %v970_v20, %v208_v16  ;;  %v268_v31 = vmul.f32 %v970_v20, %v222_v21  ;;  %v223_v32 = vld [vmem:[%s952_s13 + $0x90] sm:$0xff]  ;;  %v270_v34 = vmul.f32 %v970_v20, %v224_v22  ;;  %v212_v42 = vld [vmem:[%s952_s13 + $0x38] sm:$0xff]  ;;  %v226_v45 = vld [vmem:[%s952_s13 + $0xa8] sm:$0xff] }
  0x14   : > { %v251_v35 = vmul.f32 %v968_v19, %v205_v25  ;;  %v253_v36 = vmul.f32 %v968_v19, %v207_v26  ;;  %v267_v41 = vmul.f32 %v968_v19, %v221_v27  ;;  %v269_v44 = vmul.f32 %v968_v19, %v223_v32  ;;  %v811_v46 = vld [vmem:[%s1149_s2 + $0x8] sm:$0xff]   ;;  %v228_v49 = vld [vmem:[%s952_s13 + $0xb8] sm:$0xff]  ;;  %v812_v50 = vld [vmem:[%s1149_s2 + $0x40] sm:$0xff]  }
  0x15   : > { %715 = vmatpush3.bf16.msra.mxu0 %v803_v6  ;;  %784 = vmatpush3.bf16.msra.mxu1 %v803_v6  ;;  %v295_v38 = vadd.f32 %v976_v24, %v252_v29  ;;  %v297_v39 = vadd.f32 %v976_v24, %v254_v30  ;;  %v311_v40 = vadd.f32 %v976_v24, %v268_v31  ;;  %v209_v53 = vld [vmem:[%s952_s13 + $0x20] sm:$0xff]  ;;  %v211_v56 = vld [vmem:[%s952_s13 + $0x30] sm:$0xff]  ;;  %v214_v2 = vld [vmem:[%s952_s13 + $0x48] sm:$0xff] }
  0x16   : > { %716 = vmatprep.subr.bf16.mxu0 %v804_v7  ;;  %777 = vmatprep.subr.bf16.mxu1 %v804_v7  ;;  %v313_v43 = vadd.f32 %v976_v24, %v270_v34  ;;  %v294_v47 = vadd.f32 %v974_v23, %v251_v35  ;;  %v256_v48 = vmul.f32 %v970_v20, %v210_v37  ;;  %v225_v59 = vld [vmem:[%s952_s13 + $0xa0] sm:$0xff]  ;;  %v227_v63 = vld [vmem:[%s952_s13 + $0xb0] sm:$0xff]  ;;  %v216_v5 = vld [vmem:[%s952_s13 + $0x58] sm:$0xff] }
  0x17   : > { %814 = vtanh.f32 %v295_v38  ;;  %v296_v51 = vadd.f32 %v974_v23, %v253_v36  ;;  %v258_v52 = vmul.f32 %v970_v20, %v212_v42  ;;  %v310_v54 = vadd.f32 %v974_v23, %v267_v41  ;;  %v813_v60 = vld [vmem:[%s1149_s2] sm:$0xff]   ;;  %v230_v8 = vld [vmem:[%s952_s13 + $0xc8] sm:$0xff]  ;;  %v232_v11 = vld [vmem:[%s952_s13 + $0xd8] sm:$0xff] }
  0x18   : > { %816 = vtanh.f32 %v297_v39  ;;  %v272_v55 = vmul.f32 %v970_v20, %v226_v45  ;;  %v312_v57 = vadd.f32 %v974_v23, %v269_v44  ;;  %v274_v58 = vmul.f32 %v970_v20, %v228_v49  ;;  %v215_v17 = vld [vmem:[%s952_s13 + $0x50] sm:$0xff]  ;;  %v229_v22 = vld [vmem:[%s952_s13 + $0xc0] sm:$0xff]  ;;  %v218_v31 = vld [vmem:[%s952_s13 + $0x68] sm:$0xff] }
  0x19   : > { %717 = vmatpush3.bf16.msra.mxu0 %v805_v9  ;;  %785 = vmatpush3.bf16.msra.mxu1 %v805_v9  ;;  %818 = vtanh.f32 %v311_v40  ;;  %v299_v61 = vadd.f32 %v976_v24, %v256_v48  ;;  %v255_v62 = vmul.f32 %v968_v19, %v209_v53  ;;  %v301_v0 = vadd.f32 %v976_v24, %v258_v52  ;;  %v231_v27 = vld [vmem:[%s952_s13 + $0xd0] sm:$0xff]  ;;  %v220_v35 = vld [vmem:[%s952_s13 + $0x78] sm:$0xff]  ;;  %v234_v40 = vld [vmem:[%s952_s13 + $0xe8] sm:$0xff] }
  0x1a   : > { %718 = vmatprep.subr.bf16.mxu0 %v806_v10  ;;  %778 = vmatprep.subr.bf16.mxu1 %v806_v10  ;;  %820 = vtanh.f32 %v313_v43  ;;  %v257_v1 = vmul.f32 %v968_v19, %v211_v56  ;;  %v315_v3 = vadd.f32 %v976_v24, %v272_v55  ;;  %v271_v4 = vmul.f32 %v968_v19, %v225_v59  ;;  %v236_v44 = vld [vmem:[%s952_s13 + $0xf8] sm:$0xff]  ;;  %v217_v49 = vld [vmem:[%s952_s13 + $0x60] sm:$0xff]  ;;  %v219_v53 = vld [vmem:[%s952_s13 + $0x70] sm:$0xff] }
  0x1b   : > { %822 = vtanh.f32 %v294_v47  ;;  %v317_v6 = vadd.f32 %v976_v24, %v274_v58  ;;  %v273_v7 = vmul.f32 %v968_v19, %v227_v63  ;;  %v298_v9 = vadd.f32 %v974_v23, %v255_v62  ;;  %v233_v58 = vld [vmem:[%s952_s13 + $0xe0] sm:$0xff]  ;;  %v235_v62 = vld [vmem:[%s952_s13 + $0xf0] sm:$0xff] }
  0x1c   : > { %824 = vtanh.f32 %v296_v51  ;;  %v260_v10 = vmul.f32 %v970_v20, %v214_v2  ;;  %v300_v12 = vadd.f32 %v974_v23, %v257_v1  ;;  %v314_v15 = vadd.f32 %v974_v23, %v271_v4 }
  0x1d   : > { %719 = vmatpush3.bf16.msra.mxu0 %v807_v13  ;;  %786 = vmatpush3.bf16.msra.mxu1 %v807_v13  ;;  %826 = vtanh.f32 %v310_v54  ;;  %v262_v13 = vmul.f32 %v970_v20, %v216_v5  ;;  %v276_v16 = vmul.f32 %v970_v20, %v230_v8  ;;  %v316_v18 = vadd.f32 %v974_v23, %v273_v7 }
  0x1e   : > { %720 = vmatprep.subr.bf16.mxu0 %v808_v14  ;;  %779 = vmatprep.subr.bf16.mxu1 %v808_v14  ;;  %828 = vtanh.f32 %v312_v57  ;;  %v213_v14 = vld [vmem:[%s952_s13 + $0x40] sm:$0xff]  ;;  %v278_v21 = vmul.f32 %v970_v20, %v232_v11  ;;  %v303_v25 = vadd.f32 %v976_v24, %v260_v10  ;;  %v261_v30 = vmul.f32 %v968_v19, %v215_v17  ;;  %s1094_s13 = scalar_lea.vmem %s1151_s4, %s688_s8 }
  0x1f   : > { %830 = vtanh.f32 %v299_v61  ;;  %v259_v26 = vmul.f32 %v968_v19, %v213_v14  ;;  %v305_v29 = vadd.f32 %v976_v24, %v262_v13  ;;  %v275_v34 = vmul.f32 %v968_v19, %v229_v22 }
  0x20   : > { %832 = vtanh.f32 %v301_v0  ;;  %v321_v38 = vadd.f32 %v976_v24, %v278_v21  ;;  %v277_v39 = vmul.f32 %v968_v19, %v231_v27  ;;  %v264_v43 = vmul.f32 %v970_v20, %v218_v31 }
  0x21   : > { %721 = vmatpush3.bf16.msra.mxu0 %v809_v28  ;;  %787 = vmatpush3.bf16.msra.mxu1 %v809_v28  ;;  %834 = vtanh.f32 %v315_v3  ;;  %v302_v42 = vadd.f32 %v974_v23, %v259_v26  ;;  %v304_v47 = vadd.f32 %v974_v23, %v261_v30  ;;  %v266_v48 = vmul.f32 %v970_v20, %v220_v35 }
  0x22   : > { %722 = vmatprep.subr.bf16.mxu0 %v810_v33  ;;  %780 = vmatprep.subr.bf16.mxu1 %v810_v33  ;;  %836 = vtanh.f32 %v317_v6  ;;  %v319_v33 = vadd.f32 %v976_v24, %v276_v16  ;;  %v318_v51 = vadd.f32 %v974_v23, %v275_v34  ;;  %v280_v52 = vmul.f32 %v970_v20, %v234_v40 }
  0x23   : > { %838 = vtanh.f32 %v298_v9  ;;  %v320_v56 = vadd.f32 %v974_v23, %v277_v39  ;;  %v282_v57 = vmul.f32 %v970_v20, %v236_v44  ;;  %v263_v61 = vmul.f32 %v968_v19, %v217_v49 }
  0x24   : > { %v815_v28 = vpop.eup %814  ;;  %840 = vtanh.f32 %v300_v12  ;;  %v309_v1 = vadd.f32 %v976_v24, %v266_v48  ;;  %v265_v2 = vmul.f32 %v968_v19, %v219_v53  ;;  %v323_v20 = vadd.f32 %v976_v24, %v280_v52  ;;  %v1089_v48 = vld [vmem:[%s1150_s3] ss:$0 sm:$0xff] }
  0x25   : > { %723 = vmatpush3.bf16.msra.mxu0 %v811_v46  ;;  %788 = vmatpush3.bf16.msra.mxu1 %v811_v46  ;;  %v817_v32 = vpop.eup %816  ;;  %842 = vtanh.f32 %v314_v15  ;;  %v279_v4 = vmul.f32 %v968_v19, %v233_v58  ;;  %v325_v7 = vadd.f32 %v976_v24, %v282_v57  ;;  %v281_v8 = vmul.f32 %v968_v19, %v235_v62 }
  0x26   : > { %724 = vmatprep.subr.bf16.mxu0 %v812_v50  ;;  %781 = vmatprep.subr.bf16.mxu1 %v812_v50  ;;  %v819_v36 = vpop.eup %818  ;;  %v359_v37 = vpack.c.bf16 %v817_v32, %v815_v28  ;;  %844 = vtanh.f32 %v316_v18  ;;  %v306_v10 = vadd.f32 %v974_v23, %v263_v61  ;;  %v308_v13 = vadd.f32 %v974_v23, %v265_v2 }
  0x27   : > { %v821_v41 = vpop.eup %820  ;;  %846 = vtanh.f32 %v303_v25  ;;  %v322_v15 = vadd.f32 %v974_v23, %v279_v4  ;;  %v324_v19 = vadd.f32 %v974_v23, %v281_v8 }
  0x28   : > { %v823_v45 = vpop.eup %822  ;;  %541 = vmatprep.mubr.bf16.mxu0 %v359_v37  ;;  %v367_v46 = vpack.c.bf16 %v821_v41, %v819_v36  ;;  %848 = vtanh.f32 %v305_v29 }
  0x29   : > { %725 = vmatpush3.bf16.msra.mxu0 %v813_v60  ;;  %789 = vmatpush3.bf16.msra.mxu1 %v813_v60  ;;  %v825_v50 = vpop.eup %824  ;;  %850 = vtanh.f32 %v319_v33  ;;  %v307_v60 = vadd.f32 %v976_v24, %v264_v43 }
  0x2a   : > { %v827_v54 = vpop.eup %826  ;;  %573 = vmatprep.mubr.bf16.mxu1 %v367_v46  ;;  %v358_v55 = vpack.c.bf16 %v825_v50, %v823_v45  ;;  %852 = vtanh.f32 %v321_v38 }
  0x2b   : > { %v829_v59 = vpop.eup %828  ;;  %854 = vtanh.f32 %v302_v42 }
  0x2c   : > { %v831_v63 = vpop.eup %830  ;;  %542 = vmatmul.mubr.bf16.vlgmr.msra.gmra.mxu0 %v358_v55  ;;  %v366_v0 = vpack.c.bf16 %v829_v59, %v827_v54  ;;  %856 = vtanh.f32 %v304_v47 }
  0x2d   : > { %v833_v3 = vpop.eup %832  ;;  %858 = vtanh.f32 %v318_v51 }
  0x2e   : > { %v835_v5 = vpop.eup %834  ;;  %574 = vmatmul.mubr.bf16.vlgmr.msra.gmra.mxu1 %v366_v0  ;;  %v361_v6 = vpack.c.bf16 %v833_v3, %v831_v63  ;;  %860 = vtanh.f32 %v320_v56 }
  0x2f   : > { %v837_v9 = vpop.eup %836  ;;  %862 = vtanh.f32 %v307_v60 }
  0x30   : > { %v839_v11 = vpop.eup %838  ;;  %549 = vmatprep.mubr.bf16.mxu0 %v361_v6  ;;  %v369_v12 = vpack.c.bf16 %v837_v9, %v835_v5  ;;  %864 = vtanh.f32 %v309_v1 }
  0x31   : > { %v841_v14 = vpop.eup %840  ;;  %866 = vtanh.f32 %v323_v20 }
  0x32   : > { %v843_v16 = vpop.eup %842  ;;  %581 = vmatprep.mubr.bf16.mxu1 %v369_v12  ;;  %v360_v17 = vpack.c.bf16 %v841_v14, %v839_v11  ;;  %868 = vtanh.f32 %v325_v7 }
  0x33   : > { %v845_v24 = vpop.eup %844  ;;  %870 = vtanh.f32 %v306_v10 }
  0x34   : > { %v847_v18 = vpop.eup %846  ;;  %550 = vmatmul.mubr.bf16.gmra.mxu0 %v360_v17  ;;  %v368_v21 = vpack.c.bf16 %v845_v24, %v843_v16  ;;  %872 = vtanh.f32 %v308_v13 }
  0x35   : > { %v849_v22 = vpop.eup %848  ;;  %874 = vtanh.f32 %v322_v15 }
  0x36   : > { %v851_v25 = vpop.eup %850  ;;  %582 = vmatmul.mubr.bf16.gmra.mxu1 %v368_v21  ;;  %v363_v26 = vpack.c.bf16 %v849_v22, %v847_v18  ;;  %876 = vtanh.f32 %v324_v19 }
  0x37   : > { %v853_v27 = vpop.eup %852 }
  0x38   : > { %v855_v28 = vpop.eup %854  ;;  %557 = vmatprep.mubr.bf16.mxu0 %v363_v26  ;;  %v371_v29 = vpack.c.bf16 %v853_v27, %v851_v25 }
  0x39   : > { %v857_v30 = vpop.eup %856 }
  0x3a   : > { %v859_v31 = vpop.eup %858  ;;  %589 = vmatprep.mubr.bf16.mxu1 %v371_v29  ;;  %v362_v23 = vpack.c.bf16 %v857_v30, %v855_v28 }
  0x3b   : > { %v861_v32 = vpop.eup %860 }
  0x3c   : > { %v863_v33 = vpop.eup %862  ;;  %558 = vmatmul.mubr.bf16.gmra.mxu0 %v362_v23  ;;  %v370_v34 = vpack.c.bf16 %v861_v32, %v859_v31 }
  0x3d   : > { %v865_v35 = vpop.eup %864 }
  0x3e   : > { %v867_v36 = vpop.eup %866  ;;  %590 = vmatmul.mubr.bf16.gmra.mxu1 %v370_v34  ;;  %v365_v37 = vpack.c.bf16 %v865_v35, %v863_v33 }
  0x3f   : > { %v869_v38 = vpop.eup %868 }
  0x40   : > { %v871_v39 = vpop.eup %870  ;;  %565 = vmatprep.mubr.bf16.mxu0 %v365_v37  ;;  %v373_v40 = vpack.c.bf16 %v869_v38, %v867_v36 }
  0x41   : > { %v873_v41 = vpop.eup %872 }
  0x42   : > { %v875_v42 = vpop.eup %874  ;;  %597 = vmatprep.mubr.bf16.mxu1 %v373_v40  ;;  %v364_v43 = vpack.c.bf16 %v873_v41, %v871_v39 }
  0x43   : > { %v877_v44 = vpop.eup %876 }
  0x44   : > { %566 = vmatmul.mubr.bf16.gmra.mxu0 %v364_v43  ;;  %v372_v45 = vpack.c.bf16 %v877_v44, %v875_v42 }
  0x46   : > { %598 = vmatmul.mubr.bf16.gmra.mxu1 %v372_v45 }
  0xec   : > { %v726_v46 = vpop.f32.mrf.mxu0 }
  0xee   : > { %v750_v47 = vpop.f32.mrf.mxu1  ;;  %v727_v49 = vpop.f32.mrf.mxu0 }
  0xef   : > { %v728_v50 = vadd.f32 %v727_v49, %v726_v46 }
  0xf0   : > { %v751_v51 = vpop.f32.mrf.mxu1  ;;  %v729_v52 = vpop.f32.mrf.mxu0 }
  0xf1   : > { %v544_v53 = vadd.f32 %v728_v50, %v1089_v48  ;;  %v752_v54 = vadd.f32 %v751_v51, %v750_v47 }
  0xf2   : > { %v753_v55 = vpop.f32.mrf.mxu1  ;;  %v730_v56 = vpop.f32.mrf.mxu0 }
  0xf3   : > { %607 = vst.msk [vmem:[%s1094_s13] sm:$0xff] %vm606_vm0, %v544_v53  ;;  %v576_v57 = vadd.f32 %v752_v54, %v1089_v48  ;;  %v731_v58 = vadd.f32 %v730_v56, %v729_v52 }
  0xf4   : > { %v754_v59 = vpop.f32.mrf.mxu1  ;;  %v732_v60 = vpop.f32.mrf.mxu0 }
  0xf5   : > { %615 = vst.msk [vmem:[%s1094_s13 + $0x40] sm:$0xff] %vm606_vm0, %v576_v57  ;;  %v547_v61 = vadd.f32 %v731_v58, %v1089_v48  ;;  %v755_v62 = vadd.f32 %v754_v59, %v753_v55 }
  0xf6   : > { %v756_v63 = vpop.f32.mrf.mxu1  ;;  %v733_v0 = vpop.f32.mrf.mxu0 }
  0xf7   : > { %608 = vst.msk [vmem:[%s1094_s13 + $0x8] sm:$0xff] %vm606_vm0, %v547_v61  ;;  %v579_v1 = vadd.f32 %v755_v62, %v1089_v48  ;;  %v734_v2 = vadd.f32 %v733_v0, %v732_v60 }
  0xf8   : > { %v757_v3 = vpop.f32.mrf.mxu1  ;;  %v735_v20 = vpop.f32.mrf.mxu0 }
  0xf9   : > { %616 = vst.msk [vmem:[%s1094_s13 + $0x48] sm:$0xff] %vm606_vm0, %v579_v1  ;;  %v552_v4 = vadd.f32 %v734_v2, %v1089_v48  ;;  %v758_v5 = vadd.f32 %v757_v3, %v756_v63 }
  0xfa   : > { %v759_v6 = vpop.f32.mrf.mxu1  ;;  %v736_v7 = vpop.f32.mrf.mxu0 }
  0xfb   : > { %609 = vst.msk [vmem:[%s1094_s13 + $0x10] sm:$0xff] %vm606_vm0, %v552_v4  ;;  %v584_v8 = vadd.f32 %v758_v5, %v1089_v48  ;;  %v737_v9 = vadd.f32 %v736_v7, %v735_v20 }
  0xfc   : > { %v760_v10 = vpop.f32.mrf.mxu1  ;;  %v738_v11 = vpop.f32.mrf.mxu0 }
  0xfd   : > { %617 = vst.msk [vmem:[%s1094_s13 + $0x50] sm:$0xff] %vm606_vm0, %v584_v8  ;;  %v555_v12 = vadd.f32 %v737_v9, %v1089_v48  ;;  %v761_v13 = vadd.f32 %v760_v10, %v759_v6 }
  0xfe   : > { %v762_v14 = vpop.f32.mrf.mxu1  ;;  %v739_v15 = vpop.f32.mrf.mxu0 }
  0xff   : > { %610 = vst.msk [vmem:[%s1094_s13 + $0x18] sm:$0xff] %vm606_vm0, %v555_v12  ;;  %v587_v16 = vadd.f32 %v761_v13, %v1089_v48  ;;  %v740_v17 = vadd.f32 %v739_v15, %v738_v11 }
 0x100   : > { %v763_v19 = vpop.f32.mrf.mxu1  ;;  %v741_v24 = vpop.f32.mrf.mxu0 }
 0x101   : > { %618 = vst.msk [vmem:[%s1094_s13 + $0x58] sm:$0xff] %vm606_vm0, %v587_v16  ;;  %v560_v18 = vadd.f32 %v740_v17, %v1089_v48  ;;  %v764_v21 = vadd.f32 %v763_v19, %v762_v14 }
 0x102   : > { %v765_v22 = vpop.f32.mrf.mxu1  ;;  %v742_v25 = vpop.f32.mrf.mxu0 }
 0x103   : > { %611 = vst.msk [vmem:[%s1094_s13 + $0x20] sm:$0xff] %vm606_vm0, %v560_v18  ;;  %v592_v26 = vadd.f32 %v764_v21, %v1089_v48  ;;  %v743_v27 = vadd.f32 %v742_v25, %v741_v24 }
 0x104   : > { %v766_v28 = vpop.f32.mrf.mxu1  ;;  %v744_v29 = vpop.f32.mrf.mxu0 }
 0x105   : > { %619 = vst.msk [vmem:[%s1094_s13 + $0x60] sm:$0xff] %vm606_vm0, %v592_v26  ;;  %v563_v30 = vadd.f32 %v743_v27, %v1089_v48  ;;  %v767_v31 = vadd.f32 %v766_v28, %v765_v22 }
 0x106   : > { %v768_v23 = vpop.f32.mrf.mxu1  ;;  %v745_v32 = vpop.f32.mrf.mxu0 }
 0x107   : > { %612 = vst.msk [vmem:[%s1094_s13 + $0x28] sm:$0xff] %vm606_vm0, %v563_v30  ;;  %v595_v33 = vadd.f32 %v767_v31, %v1089_v48  ;;  %v746_v34 = vadd.f32 %v745_v32, %v744_v29 }
 0x108   : > { %v769_v35 = vpop.f32.mrf.mxu1  ;;  %v747_v36 = vpop.f32.mrf.mxu0 }
 0x109   : > { %620 = vst.msk [vmem:[%s1094_s13 + $0x68] sm:$0xff] %vm606_vm0, %v595_v33  ;;  %v568_v37 = vadd.f32 %v746_v34, %v1089_v48  ;;  %v770_v38 = vadd.f32 %v769_v35, %v768_v23 }
 0x10a   : > { %v771_v39 = vpop.f32.mrf.mxu1  ;;  %v748_v40 = vpop.f32.mrf.mxu0 }
 0x10b   : > { %613 = vst.msk [vmem:[%s1094_s13 + $0x30] sm:$0xff] %vm606_vm0, %v568_v37  ;;  %v600_v41 = vadd.f32 %v770_v38, %v1089_v48  ;;  %v749_v42 = vadd.f32 %v748_v40, %v747_v36 }
 0x10c   : > { %v772_v43 = vpop.f32.mrf.mxu1 }
 0x10d   : > { %621 = vst.msk [vmem:[%s1094_s13 + $0x70] sm:$0xff] %vm606_vm0, %v600_v41  ;;  %v571_v44 = vadd.f32 %v749_v42, %v1089_v48  ;;  %v773_v45 = vadd.f32 %v772_v43, %v771_v39 }
 0x10f   : > { %614 = vst.msk [vmem:[%s1094_s13 + $0x38] sm:$0xff] %vm606_vm0, %v571_v44  ;;  %v603_v46 = vadd.f32 %v773_v45, %v1089_v48 }
 0x111   : > { %622 = vst.msk [vmem:[%s1094_s13 + $0x78] sm:$0xff] %vm606_vm0, %v603_v46 }
 0x112 PF: > { %s14_s15 = sadd.s32 1, %s884_s15  }
 0x113   : > { %p11_p4 = scmp.ge.s32.totalorder %s14_s15, 4  }
 0x115   :  { %13 = sbr.rel (!%p11_p4) target bundleno = 1 (0x1), region = 67 }

</bundles_post_ra>
